<compile_context>
chip_gen: v5e
topology: v5e:2x2
jax: 0.10.0
libtpu: 0.0.40
codegen_flags: <defaults>
</compile_context>

<pallas_src>
import functools

import jax
import jax.numpy as jnp
from jax.experimental import pallas as pl
from jax.experimental.pallas import tpu as pltpu


# ----------------------------- in-kernel helpers -----------------------------


def _layernorm(y, g, b, eps):
    """LayerNorm over the last dim. y: f32 (S, D); g, b: (1, D)."""
    mu = jnp.mean(y, axis=-1, keepdims=True)
    yc = y - mu
    var = jnp.mean(yc * yc, axis=-1, keepdims=True)
    return yc * jax.lax.rsqrt(var + eps) * g + b


# ------------------------- fused encoder stack kernel ------------------------


def _fused_encoder_kernel(q_ref, k_ref, x_ref,
                          wq_ref, bq_ref, wk_ref, bk_ref, wv_ref, bv_ref,
                          wo_ref, bo_ref, g1_ref, be1_ref,
                          w1_ref, b1_ref, w2_ref, b2_ref, g2_ref, be2_ref,
                          *rest, nhead, scale, eps, final_norm):
    """One grid step = (one batch element, one layer).

    Activation blocks are (1, S, D) (lane-dense); parameter blocks are the
    l-th layer's stacked tensors.  The evolving `output` is carried across
    layer steps in the f32 VMEM scratch `xs_ref`.
    """
    if final_norm:
        fng_ref, fnb_ref, o_ref, xs_ref = rest
    else:
        o_ref, xs_ref = rest

    l = pl.program_id(1)
    f32 = jnp.float32
    bf16 = jnp.bfloat16

    # Layer 0: load this batch's src into the carry.
    @pl.when(l == 0)
    def _init():
        xs_ref[...] = x_ref[0].astype(f32)

    x = xs_ref[...]                                   # (S, D) f32

    def mm(a, w_ref, b_ref):
        # bf16 MXU operands, f32 accumulation; bias add in f32 on the VPU.
        return jnp.dot(a.astype(bf16), w_ref[0],
                       preferred_element_type=f32) + b_ref[0]

    # --- Q/K/V projections (Q,K from fixed query/key; V from the carry) ---
    qp = mm(q_ref[0], wq_ref, bq_ref) * scale         # scale folded into Q
    kp = mm(k_ref[0], wk_ref, bk_ref)
    vp = mm(x, wv_ref, bv_ref)

    # --- multi-head attention: heads = static slices of the lane dim ---
    dh = qp.shape[-1] // nhead
    head_outs = []
    for h in range(nhead):                            # static unroll
        sl = slice(h * dh, (h + 1) * dh)
        qh = qp[:, sl].astype(bf16)
        kh = kp[:, sl].astype(bf16)
        vh = vp[:, sl].astype(bf16)
        # scores: contract the last dims (q @ k^T) — no explicit transpose.
        s = jax.lax.dot_general(qh, kh, (((1,), (1,)), ((), ())),
                                preferred_element_type=f32)   # (S, S)
        s = s - jnp.max(s, axis=-1, keepdims=True)
        p = jnp.exp(s)
        p = p / jnp.sum(p, axis=-1, keepdims=True)            # exact softmax
        head_outs.append(jnp.dot(p.astype(bf16), vh,
                                 preferred_element_type=f32))  # (S, dh)
    attn = jnp.concatenate(head_outs, axis=-1)                 # (S, D) f32

    # --- out_proj + residual + LayerNorm1 (f32 VPU math) ---
    x1 = _layernorm(mm(attn, wo_ref, bo_ref) + x,
                    g1_ref[0], be1_ref[0], eps)

    # --- FFN (lin1 + ReLU + lin2) + residual + LayerNorm2 ---
    h1 = jnp.maximum(mm(x1, w1_ref, b1_ref), 0.0)
    x2 = _layernorm(mm(h1, w2_ref, b2_ref) + x1,
                    g2_ref[0], be2_ref[0], eps)

    xs_ref[...] = x2                                  # carry to next layer

    # Last layer: optional final LayerNorm folded in, single lane-dense store.
    @pl.when(l == pl.num_programs(1) - 1)
    def _store():
        out = x2
        if final_norm:
            out = _layernorm(out, fng_ref[...], fnb_ref[...], eps)
        o_ref[0] = out.astype(o_ref.dtype)


# --------------------------------- wrapper -----------------------------------


_PARAM_ORDER = ("wq", "bq", "wk", "bk", "wv", "bv", "wo", "bo",
                "ln1_g", "ln1_b", "w1", "b1", "w2", "b2", "ln2_g", "ln2_b")


def transformer_encoder_qkv(query, key, src, params, nhead, norm=None,
                            eps=1e-5):
    """query/key/src: (S, B, D).  params: dict of per-layer stacked tensors
    (leading dim = num_layers; matmul weights pre-transposed to (in, out),
    bf16).  norm: optional (gamma, beta) for the final LayerNorm.
    Returns (S, B, D) in src.dtype."""
    S, B, D = src.shape
    assert D % nhead == 0
    num_layers = params["wq"].shape[0]
    FF = params["w1"].shape[-1]
    scale = (D // nhead) ** -0.5
    final_norm = norm is not None

    # One-time tiny layout change to (B, S, D): D stays lane-dense, the grid
    # tiles over batch, and no per-layer XLA transposes are needed.
    q_bsd = jnp.transpose(query, (1, 0, 2))
    k_bsd = jnp.transpose(key, (1, 0, 2))
    x_bsd = jnp.transpose(src, (1, 0, 2))

    act_spec = pl.BlockSpec((1, S, D), lambda b, l: (b, 0, 0))

    def param_spec(a):   # stacked per-layer tensor (L, x, y) -> layer l block
        return pl.BlockSpec((1,) + a.shape[1:], lambda b, l: (l, 0, 0))

    inputs = [q_bsd, k_bsd, x_bsd] + [params[n] for n in _PARAM_ORDER]
    in_specs = [act_spec] * 3 + [param_spec(params[n]) for n in _PARAM_ORDER]
    if final_norm:
        gamma, beta = norm
        inputs += [gamma.reshape(1, D).astype(jnp.float32),
                   beta.reshape(1, D).astype(jnp.float32)]
        in_specs += [pl.BlockSpec((1, D), lambda b, l: (0, 0))] * 2

    # Advisory cost hint so XLA schedules the custom call sensibly.
    flops_step = 8 * S * D * D + 4 * S * S * D + 4 * S * D * FF
    cost = pl.CostEstimate(
        flops=int(B * num_layers * flops_step),
        transcendentals=int(B * num_layers * nhead * S * S),
        bytes_accessed=int(B * num_layers * (4 * D * D + 2 * D * FF) * 2
                           + 4 * B * S * D * 4),
    )

    out_bsd = pl.pallas_call(
        functools.partial(_fused_encoder_kernel, nhead=nhead, scale=scale,
                          eps=eps, final_norm=final_norm),
        out_shape=jax.ShapeDtypeStruct((B, S, D), src.dtype),
        grid=(B, num_layers),                 # layer axis innermost (carry)
        in_specs=in_specs,
        out_specs=act_spec,
        scratch_shapes=[pltpu.VMEM((S, D), jnp.float32)],
        compiler_params=pltpu.CompilerParams(
            dimension_semantics=("parallel", "arbitrary")),
        cost_estimate=cost,
    )(*inputs)

    return jnp.transpose(out_bsd, (1, 0, 2))


# ------------------------------- initialization -------------------------------


def init_params(key, d_model, dim_ff, num_layers):
    """One encoder layer's parameters (deepcopy => identical per layer),
    stacked along a leading layer axis so the kernel streams layer l's block.
    Matmul weights are pre-transposed once to (in, out) and cast to bf16 (MXU
    operands); biases / LayerNorm params stay f32 (VPU epilogue math)."""
    ks = jax.random.split(key, 10)
    s = 0.02
    f32 = jnp.float32

    def rnd(k, shape):
        return jax.random.normal(k, shape, f32) * s

    # torch: in_proj_weight (3D, D) = [Wq; Wk; Wv]; Linear weight is (out, in)
    # applied as x @ W.T.
    in_proj = rnd(ks[0], (3 * d_model, d_model))
    wq, wk, wv = jnp.split(in_proj, 3, axis=0)

    def mat(w):     # (out, in) -> (L, in, out) bf16
        wt = w.T.astype(jnp.bfloat16)
        return jnp.broadcast_to(wt[None], (num_layers,) + wt.shape)

    def vec(v):     # (dim,) -> (L, 1, dim) f32
        v = v.reshape(1, 1, -1).astype(f32)
        return jnp.broadcast_to(v, (num_layers,) + v.shape[1:])

    return {
        "wq": mat(wq), "bq": vec(rnd(ks[1], (d_model,))),
        "wk": mat(wk), "bk": vec(rnd(ks[2], (d_model,))),
        "wv": mat(wv), "bv": vec(rnd(ks[3], (d_model,))),
        "wo": mat(rnd(ks[4], (d_model, d_model))),
        "bo": vec(rnd(ks[5], (d_model,))),
        "w1": mat(rnd(ks[6], (dim_ff, d_model))),
        "b1": vec(rnd(ks[7], (dim_ff,))),
        "w2": mat(rnd(ks[8], (d_model, dim_ff))),
        "b2": vec(rnd(ks[9], (d_model,))),
        "ln1_g": vec(jnp.ones((d_model,), f32)),
        "ln1_b": vec(jnp.zeros((d_model,), f32)),
        "ln2_g": vec(jnp.ones((d_model,), f32)),
        "ln2_b": vec(jnp.zeros((d_model,), f32)),
    }


# ------------------------------ pure-JAX reference ----------------------------


def _reference(query, key, src, params, nhead, norm=None, eps=1e-5):
    """f32 reference of the same forward (weights up-cast from bf16)."""
    S, B, D = src.shape
    dh = D // nhead
    scale = dh ** -0.5
    num_layers = params["wq"].shape[0]

    def ln(y, g, b):
        mu = y.mean(-1, keepdims=True)
        yc = y - mu
        return yc * jax.lax.rsqrt((yc * yc).mean(-1, keepdims=True) + eps) * g + b

    def split_heads(t):    # (S*B, D) -> (B, H, S, dh)
        return t.reshape(S, B, nhead, dh).transpose(1, 2, 0, 3)

    q2 = query.reshape(S * B, D).astype(jnp.float32)
    k2 = key.reshape(S * B, D).astype(jnp.float32)
    x2 = src.reshape(S * B, D).astype(jnp.float32)
    for l in range(num_layers):
        p = {n: params[n][l].astype(jnp.float32) for n in params}
        qh = split_heads(q2 @ p["wq"] + p["bq"][0])
        kh = split_heads(k2 @ p["wk"] + p["bk"][0])
        vh = split_heads(x2 @ p["wv"] + p["bv"][0])
        s = jnp.einsum("bhqd,bhkd->bhqk", qh, kh) * scale
        a = jnp.einsum("bhqk,bhkd->bhqd", jax.nn.softmax(s, -1), vh)
        a2 = a.transpose(2, 0, 1, 3).reshape(S * B, D)
        x1 = ln(a2 @ p["wo"] + p["bo"][0] + x2, p["ln1_g"][0], p["ln1_b"][0])
        h = jax.nn.relu(x1 @ p["w1"] + p["b1"][0])
        x2 = ln(h @ p["w2"] + p["b2"][0] + x1, p["ln2_g"][0], p["ln2_b"][0])
    out = x2
    if norm is not None:
        g, b = norm
        out = ln(out, g.astype(jnp.float32), b.astype(jnp.float32))
    return out.reshape(S, B, D)


# ----------------------------------- main -------------------------------------


if __name__ == "__main__":
    S, B, D, H, FF, L = 8, 2, 32, 4, 64, 2

    root = jax.random.PRNGKey(0)
    kq, kk, ksrc, kp = jax.random.split(root, 4)
    query = jax.random.normal(kq, (S, B, D), jnp.float32)
    key_t = jax.random.normal(kk, (S, B, D), jnp.float32)
    src = jax.random.normal(ksrc, (S, B, D), jnp.float32)

    params = init_params(kp, D, FF, L)   # deepcopy semantics: identical layers

    fwd = jax.jit(functools.partial(transformer_encoder_qkv, nhead=H, norm=None))
    out = jax.block_until_ready(fwd(query, key_t, src, params))

    ref = _reference(query, key_t, src, params, nhead=H, norm=None)
    err = float(jnp.max(jnp.abs(out - ref)))

    assert out.shape == (S, B, D), out.shape
    assert bool(jnp.all(jnp.isfinite(out)))
    assert err < 5e-2, f"max abs error vs reference: {err}"
    print("KERNEL_OK")
</pallas_src>

<mosaic_0001>
module attributes {stable_mosaic.version = 11 : i64} {
  func.func @_fused_encoder_kernel(%arg0: i32, %arg1: i32, %arg2: memref<1x8x32xf32, #tpu.memory_space<vmem>>, %arg3: memref<1x8x32xf32, #tpu.memory_space<vmem>>, %arg4: memref<1x8x32xf32, #tpu.memory_space<vmem>>, %arg5: memref<1x32x32xbf16, #tpu.memory_space<vmem>>, %arg6: memref<1x1x32xf32, #tpu.memory_space<vmem>>, %arg7: memref<1x32x32xbf16, #tpu.memory_space<vmem>>, %arg8: memref<1x1x32xf32, #tpu.memory_space<vmem>>, %arg9: memref<1x32x32xbf16, #tpu.memory_space<vmem>>, %arg10: memref<1x1x32xf32, #tpu.memory_space<vmem>>, %arg11: memref<1x32x32xbf16, #tpu.memory_space<vmem>>, %arg12: memref<1x1x32xf32, #tpu.memory_space<vmem>>, %arg13: memref<1x1x32xf32, #tpu.memory_space<vmem>>, %arg14: memref<1x1x32xf32, #tpu.memory_space<vmem>>, %arg15: memref<1x32x64xbf16, #tpu.memory_space<vmem>>, %arg16: memref<1x1x64xf32, #tpu.memory_space<vmem>>, %arg17: memref<1x64x32xbf16, #tpu.memory_space<vmem>>, %arg18: memref<1x1x32xf32, #tpu.memory_space<vmem>>, %arg19: memref<1x1x32xf32, #tpu.memory_space<vmem>>, %arg20: memref<1x1x32xf32, #tpu.memory_space<vmem>>, %arg21: memref<1x8x32xf32, #tpu.memory_space<vmem>>, %arg22: memref<8x32xf32, #tpu.memory_space<vmem>>) attributes {dimension_semantics = [#tpu.dimension_semantics<parallel>, #tpu.dimension_semantics<arbitrary>], iteration_bounds = array<i64: 2, 2>, scalar_prefetch = 0 : i64, scratch_operands = 1 : i64, tpu.core_type = #tpu.core_type<tc>, window_params = [{transform_indices = @transform_0, window_bounds = array<i64: 1, 8, 32>}, {transform_indices = @transform_1, window_bounds = array<i64: 1, 8, 32>}, {transform_indices = @transform_2, window_bounds = array<i64: 1, 8, 32>}, {transform_indices = @transform_3, window_bounds = array<i64: 1, 32, 32>}, {transform_indices = @transform_4, window_bounds = array<i64: 1, 1, 32>}, {transform_indices = @transform_5, window_bounds = array<i64: 1, 32, 32>}, {transform_indices = @transform_6, window_bounds = array<i64: 1, 1, 32>}, {transform_indices = @transform_7, window_bounds = array<i64: 1, 32, 32>}, {transform_indices = @transform_8, window_bounds = array<i64: 1, 1, 32>}, {transform_indices = @transform_9, window_bounds = array<i64: 1, 32, 32>}, {transform_indices = @transform_10, window_bounds = array<i64: 1, 1, 32>}, {transform_indices = @transform_11, window_bounds = array<i64: 1, 1, 32>}, {transform_indices = @transform_12, window_bounds = array<i64: 1, 1, 32>}, {transform_indices = @transform_13, window_bounds = array<i64: 1, 32, 64>}, {transform_indices = @transform_14, window_bounds = array<i64: 1, 1, 64>}, {transform_indices = @transform_15, window_bounds = array<i64: 1, 64, 32>}, {transform_indices = @transform_16, window_bounds = array<i64: 1, 1, 32>}, {transform_indices = @transform_17, window_bounds = array<i64: 1, 1, 32>}, {transform_indices = @transform_18, window_bounds = array<i64: 1, 1, 32>}, {transform_indices = @transform_19, window_bounds = array<i64: 1, 8, 32>}]} {
    %c0_i32 = arith.constant 0 : i32
    %0 = arith.cmpi eq, %arg1, %c0_i32 : i32
    %1 = arith.extui %0 : i1 to i32
    %c0_i32_0 = arith.constant 0 : i32
    %2 = arith.cmpi ne, %1, %c0_i32_0 : i32
    scf.if %2 {
      %c0_92 = arith.constant 0 : index
      %c0_93 = arith.constant 0 : index
      %c0_94 = arith.constant 0 : index
      %187 = vector.load %arg4[%c0_92, %c0_93, %c0_94] : memref<1x8x32xf32, #tpu.memory_space<vmem>>, vector<1x8x32xf32>
      %188 = vector.shape_cast %187 : vector<1x8x32xf32> to vector<8x32xf32>
      %c0_95 = arith.constant 0 : index
      %c0_96 = arith.constant 0 : index
      %189 = vector.load %arg22[%c0_95, %c0_96] : memref<8x32xf32, #tpu.memory_space<vmem>>, vector<8x32xf32>
      tpu.vector_store %arg22[%c0_95, %c0_96], %188 {strides = array<i32>} : memref<8x32xf32, #tpu.memory_space<vmem>>, vector<8x32xf32>,
    } else {
    }
    %c0 = arith.constant 0 : index
    %c0_1 = arith.constant 0 : index
    %3 = vector.load %arg22[%c0, %c0_1] : memref<8x32xf32, #tpu.memory_space<vmem>>, vector<8x32xf32>
    %c0_2 = arith.constant 0 : index
    %c0_3 = arith.constant 0 : index
    %c0_4 = arith.constant 0 : index
    %4 = vector.load %arg2[%c0_2, %c0_3, %c0_4] : memref<1x8x32xf32, #tpu.memory_space<vmem>>, vector<1x8x32xf32>
    %5 = vector.shape_cast %4 : vector<1x8x32xf32> to vector<8x32xf32>
    %6 = arith.truncf %5 : vector<8x32xf32> to vector<8x32xbf16>
    %c0_5 = arith.constant 0 : index
    %c0_6 = arith.constant 0 : index
    %c0_7 = arith.constant 0 : index
    %7 = vector.load %arg5[%c0_5, %c0_6, %c0_7] : memref<1x32x32xbf16, #tpu.memory_space<vmem>>, vector<1x32x32xbf16>
    %8 = vector.shape_cast %7 : vector<1x32x32xbf16> to vector<32x32xbf16>
    %cst = arith.constant dense<0.000000e+00> : vector<8x32xf32>
    %9 = tpu.matmul %6, %8, %cst {dimension_numbers = #tpu.dot_dimension_numbers<[1], [0], [0], [1], [0, 0, 1, 1], [], []>} : vector<8x32xbf16>, vector<32x32xbf16>, vector<8x32xf32> -> vector<8x32xf32>
    %c0_8 = arith.constant 0 : index
    %c0_9 = arith.constant 0 : index
    %c0_10 = arith.constant 0 : index
    %10 = vector.load %arg6[%c0_8, %c0_9, %c0_10] : memref<1x1x32xf32, #tpu.memory_space<vmem>>, vector<1x1x32xf32>
    %11 = vector.shape_cast %10 : vector<1x1x32xf32> to vector<1x32xf32>
    %12 = vector.broadcast %11 : vector<1x32xf32> to vector<8x32xf32>
    %13 = arith.addf %9, %12 : vector<8x32xf32>
    %cst_11 = arith.constant 0.353553385 : f32
    %14 = vector.broadcast %cst_11 : f32 to vector<8x32xf32>
    %15 = arith.mulf %13, %14 : vector<8x32xf32>
    %c0_12 = arith.constant 0 : index
    %c0_13 = arith.constant 0 : index
    %c0_14 = arith.constant 0 : index
    %16 = vector.load %arg3[%c0_12, %c0_13, %c0_14] : memref<1x8x32xf32, #tpu.memory_space<vmem>>, vector<1x8x32xf32>
    %17 = vector.shape_cast %16 : vector<1x8x32xf32> to vector<8x32xf32>
    %18 = arith.truncf %17 : vector<8x32xf32> to vector<8x32xbf16>
    %c0_15 = arith.constant 0 : index
    %c0_16 = arith.constant 0 : index
    %c0_17 = arith.constant 0 : index
    %19 = vector.load %arg7[%c0_15, %c0_16, %c0_17] : memref<1x32x32xbf16, #tpu.memory_space<vmem>>, vector<1x32x32xbf16>
    %20 = vector.shape_cast %19 : vector<1x32x32xbf16> to vector<32x32xbf16>
    %cst_18 = arith.constant dense<0.000000e+00> : vector<8x32xf32>
    %21 = tpu.matmul %18, %20, %cst_18 {dimension_numbers = #tpu.dot_dimension_numbers<[1], [0], [0], [1], [0, 0, 1, 1], [], []>} : vector<8x32xbf16>, vector<32x32xbf16>, vector<8x32xf32> -> vector<8x32xf32>
    %c0_19 = arith.constant 0 : index
    %c0_20 = arith.constant 0 : index
    %c0_21 = arith.constant 0 : index
    %22 = vector.load %arg8[%c0_19, %c0_20, %c0_21] : memref<1x1x32xf32, #tpu.memory_space<vmem>>, vector<1x1x32xf32>
    %23 = vector.shape_cast %22 : vector<1x1x32xf32> to vector<1x32xf32>
    %24 = vector.broadcast %23 : vector<1x32xf32> to vector<8x32xf32>
    %25 = arith.addf %21, %24 : vector<8x32xf32>
    %26 = arith.truncf %3 : vector<8x32xf32> to vector<8x32xbf16>
    %c0_22 = arith.constant 0 : index
    %c0_23 = arith.constant 0 : index
    %c0_24 = arith.constant 0 : index
    %27 = vector.load %arg9[%c0_22, %c0_23, %c0_24] : memref<1x32x32xbf16, #tpu.memory_space<vmem>>, vector<1x32x32xbf16>
    %28 = vector.shape_cast %27 : vector<1x32x32xbf16> to vector<32x32xbf16>
    %cst_25 = arith.constant dense<0.000000e+00> : vector<8x32xf32>
    %29 = tpu.matmul %26, %28, %cst_25 {dimension_numbers = #tpu.dot_dimension_numbers<[1], [0], [0], [1], [0, 0, 1, 1], [], []>} : vector<8x32xbf16>, vector<32x32xbf16>, vector<8x32xf32> -> vector<8x32xf32>
    %c0_26 = arith.constant 0 : index
    %c0_27 = arith.constant 0 : index
    %c0_28 = arith.constant 0 : index
    %30 = vector.load %arg10[%c0_26, %c0_27, %c0_28] : memref<1x1x32xf32, #tpu.memory_space<vmem>>, vector<1x1x32xf32>
    %31 = vector.shape_cast %30 : vector<1x1x32xf32> to vector<1x32xf32>
    %32 = vector.broadcast %31 : vector<1x32xf32> to vector<8x32xf32>
    %33 = arith.addf %29, %32 : vector<8x32xf32>
    %34 = vector.extract_strided_slice %15 {offsets = [0, 0], sizes = [8, 8], strides = [1, 1]} : vector<8x32xf32> to vector<8x8xf32>
    %35 = arith.truncf %34 : vector<8x8xf32> to vector<8x8xbf16>
    %36 = vector.extract_strided_slice %25 {offsets = [0, 0], sizes = [8, 8], strides = [1, 1]} : vector<8x32xf32> to vector<8x8xf32>
    %37 = arith.truncf %36 : vector<8x8xf32> to vector<8x8xbf16>
    %38 = vector.extract_strided_slice %33 {offsets = [0, 0], sizes = [8, 8], strides = [1, 1]} : vector<8x32xf32> to vector<8x8xf32>
    %39 = arith.truncf %38 : vector<8x8xf32> to vector<8x8xbf16>
    %cst_29 = arith.constant dense<0.000000e+00> : vector<8x8xf32>
    %40 = tpu.matmul %35, %37, %cst_29 {dimension_numbers = #tpu.dot_dimension_numbers<[1], [1], [0], [0], [0, 0, 1, 0], [], []>} : vector<8x8xbf16>, vector<8x8xbf16>, vector<8x8xf32> -> vector<8x8xf32>
    %cst_30 = arith.constant dense<0xFF800000> : vector<8xf32>
    %41 = vector.multi_reduction <maximumf>, %40, %cst_30 [1] : vector<8x8xf32> to vector<8xf32>
    %42 = vector.shape_cast %41 : vector<8xf32> to vector<8x1xf32>
    %43 = vector.broadcast %42 : vector<8x1xf32> to vector<8x8xf32>
    %44 = arith.subf %40, %43 : vector<8x8xf32>
    %45 = math.exp %44 : vector<8x8xf32>
    %cst_31 = arith.constant dense<0.000000e+00> : vector<8xf32>
    %46 = vector.multi_reduction <add>, %45, %cst_31 [1] : vector<8x8xf32> to vector<8xf32>
    %47 = vector.shape_cast %46 : vector<8xf32> to vector<8x1xf32>
    %48 = vector.broadcast %47 : vector<8x1xf32> to vector<8x8xf32>
    %49 = arith.divf %45, %48 : vector<8x8xf32>
    %50 = arith.truncf %49 : vector<8x8xf32> to vector<8x8xbf16>
    %cst_32 = arith.constant dense<0.000000e+00> : vector<8x8xf32>
    %51 = tpu.matmul %50, %39, %cst_32 {dimension_numbers = #tpu.dot_dimension_numbers<[1], [0], [0], [1], [0, 0, 1, 1], [], []>} : vector<8x8xbf16>, vector<8x8xbf16>, vector<8x8xf32> -> vector<8x8xf32>
    %52 = vector.extract_strided_slice %15 {offsets = [0, 8], sizes = [8, 8], strides = [1, 1]} : vector<8x32xf32> to vector<8x8xf32>
    %53 = arith.truncf %52 : vector<8x8xf32> to vector<8x8xbf16>
    %54 = vector.extract_strided_slice %25 {offsets = [0, 8], sizes = [8, 8], strides = [1, 1]} : vector<8x32xf32> to vector<8x8xf32>
    %55 = arith.truncf %54 : vector<8x8xf32> to vector<8x8xbf16>
    %56 = vector.extract_strided_slice %33 {offsets = [0, 8], sizes = [8, 8], strides = [1, 1]} : vector<8x32xf32> to vector<8x8xf32>
    %57 = arith.truncf %56 : vector<8x8xf32> to vector<8x8xbf16>
    %cst_33 = arith.constant dense<0.000000e+00> : vector<8x8xf32>
    %58 = tpu.matmul %53, %55, %cst_33 {dimension_numbers = #tpu.dot_dimension_numbers<[1], [1], [0], [0], [0, 0, 1, 0], [], []>} : vector<8x8xbf16>, vector<8x8xbf16>, vector<8x8xf32> -> vector<8x8xf32>
    %cst_34 = arith.constant dense<0xFF800000> : vector<8xf32>
    %59 = vector.multi_reduction <maximumf>, %58, %cst_34 [1] : vector<8x8xf32> to vector<8xf32>
    %60 = vector.shape_cast %59 : vector<8xf32> to vector<8x1xf32>
    %61 = vector.broadcast %60 : vector<8x1xf32> to vector<8x8xf32>
    %62 = arith.subf %58, %61 : vector<8x8xf32>
    %63 = math.exp %62 : vector<8x8xf32>
    %cst_35 = arith.constant dense<0.000000e+00> : vector<8xf32>
    %64 = vector.multi_reduction <add>, %63, %cst_35 [1] : vector<8x8xf32> to vector<8xf32>
    %65 = vector.shape_cast %64 : vector<8xf32> to vector<8x1xf32>
    %66 = vector.broadcast %65 : vector<8x1xf32> to vector<8x8xf32>
    %67 = arith.divf %63, %66 : vector<8x8xf32>
    %68 = arith.truncf %67 : vector<8x8xf32> to vector<8x8xbf16>
    %cst_36 = arith.constant dense<0.000000e+00> : vector<8x8xf32>
    %69 = tpu.matmul %68, %57, %cst_36 {dimension_numbers = #tpu.dot_dimension_numbers<[1], [0], [0], [1], [0, 0, 1, 1], [], []>} : vector<8x8xbf16>, vector<8x8xbf16>, vector<8x8xf32> -> vector<8x8xf32>
    %70 = vector.extract_strided_slice %15 {offsets = [0, 16], sizes = [8, 8], strides = [1, 1]} : vector<8x32xf32> to vector<8x8xf32>
    %71 = arith.truncf %70 : vector<8x8xf32> to vector<8x8xbf16>
    %72 = vector.extract_strided_slice %25 {offsets = [0, 16], sizes = [8, 8], strides = [1, 1]} : vector<8x32xf32> to vector<8x8xf32>
    %73 = arith.truncf %72 : vector<8x8xf32> to vector<8x8xbf16>
    %74 = vector.extract_strided_slice %33 {offsets = [0, 16], sizes = [8, 8], strides = [1, 1]} : vector<8x32xf32> to vector<8x8xf32>
    %75 = arith.truncf %74 : vector<8x8xf32> to vector<8x8xbf16>
    %cst_37 = arith.constant dense<0.000000e+00> : vector<8x8xf32>
    %76 = tpu.matmul %71, %73, %cst_37 {dimension_numbers = #tpu.dot_dimension_numbers<[1], [1], [0], [0], [0, 0, 1, 0], [], []>} : vector<8x8xbf16>, vector<8x8xbf16>, vector<8x8xf32> -> vector<8x8xf32>
    %cst_38 = arith.constant dense<0xFF800000> : vector<8xf32>
    %77 = vector.multi_reduction <maximumf>, %76, %cst_38 [1] : vector<8x8xf32> to vector<8xf32>
    %78 = vector.shape_cast %77 : vector<8xf32> to vector<8x1xf32>
    %79 = vector.broadcast %78 : vector<8x1xf32> to vector<8x8xf32>
    %80 = arith.subf %76, %79 : vector<8x8xf32>
    %81 = math.exp %80 : vector<8x8xf32>
    %cst_39 = arith.constant dense<0.000000e+00> : vector<8xf32>
    %82 = vector.multi_reduction <add>, %81, %cst_39 [1] : vector<8x8xf32> to vector<8xf32>
    %83 = vector.shape_cast %82 : vector<8xf32> to vector<8x1xf32>
    %84 = vector.broadcast %83 : vector<8x1xf32> to vector<8x8xf32>
    %85 = arith.divf %81, %84 : vector<8x8xf32>
    %86 = arith.truncf %85 : vector<8x8xf32> to vector<8x8xbf16>
    %cst_40 = arith.constant dense<0.000000e+00> : vector<8x8xf32>
    %87 = tpu.matmul %86, %75, %cst_40 {dimension_numbers = #tpu.dot_dimension_numbers<[1], [0], [0], [1], [0, 0, 1, 1], [], []>} : vector<8x8xbf16>, vector<8x8xbf16>, vector<8x8xf32> -> vector<8x8xf32>
    %88 = vector.extract_strided_slice %15 {offsets = [0, 24], sizes = [8, 8], strides = [1, 1]} : vector<8x32xf32> to vector<8x8xf32>
    %89 = arith.truncf %88 : vector<8x8xf32> to vector<8x8xbf16>
    %90 = vector.extract_strided_slice %25 {offsets = [0, 24], sizes = [8, 8], strides = [1, 1]} : vector<8x32xf32> to vector<8x8xf32>
    %91 = arith.truncf %90 : vector<8x8xf32> to vector<8x8xbf16>
    %92 = vector.extract_strided_slice %33 {offsets = [0, 24], sizes = [8, 8], strides = [1, 1]} : vector<8x32xf32> to vector<8x8xf32>
    %93 = arith.truncf %92 : vector<8x8xf32> to vector<8x8xbf16>
    %cst_41 = arith.constant dense<0.000000e+00> : vector<8x8xf32>
    %94 = tpu.matmul %89, %91, %cst_41 {dimension_numbers = #tpu.dot_dimension_numbers<[1], [1], [0], [0], [0, 0, 1, 0], [], []>} : vector<8x8xbf16>, vector<8x8xbf16>, vector<8x8xf32> -> vector<8x8xf32>
    %cst_42 = arith.constant dense<0xFF800000> : vector<8xf32>
    %95 = vector.multi_reduction <maximumf>, %94, %cst_42 [1] : vector<8x8xf32> to vector<8xf32>
    %96 = vector.shape_cast %95 : vector<8xf32> to vector<8x1xf32>
    %97 = vector.broadcast %96 : vector<8x1xf32> to vector<8x8xf32>
    %98 = arith.subf %94, %97 : vector<8x8xf32>
    %99 = math.exp %98 : vector<8x8xf32>
    %cst_43 = arith.constant dense<0.000000e+00> : vector<8xf32>
    %100 = vector.multi_reduction <add>, %99, %cst_43 [1] : vector<8x8xf32> to vector<8xf32>
    %101 = vector.shape_cast %100 : vector<8xf32> to vector<8x1xf32>
    %102 = vector.broadcast %101 : vector<8x1xf32> to vector<8x8xf32>
    %103 = arith.divf %99, %102 : vector<8x8xf32>
    %104 = arith.truncf %103 : vector<8x8xf32> to vector<8x8xbf16>
    %cst_44 = arith.constant dense<0.000000e+00> : vector<8x8xf32>
    %105 = tpu.matmul %104, %93, %cst_44 {dimension_numbers = #tpu.dot_dimension_numbers<[1], [0], [0], [1], [0, 0, 1, 1], [], []>} : vector<8x8xbf16>, vector<8x8xbf16>, vector<8x8xf32> -> vector<8x8xf32>
    %106 = tpu.concatenate %51, %69, %87, %105 in 1 : vector<8x8xf32>, vector<8x8xf32>, vector<8x8xf32>, vector<8x8xf32> -> vector<8x32xf32>
    %107 = arith.truncf %106 : vector<8x32xf32> to vector<8x32xbf16>
    %c0_45 = arith.constant 0 : index
    %c0_46 = arith.constant 0 : index
    %c0_47 = arith.constant 0 : index
    %108 = vector.load %arg11[%c0_45, %c0_46, %c0_47] : memref<1x32x32xbf16, #tpu.memory_space<vmem>>, vector<1x32x32xbf16>
    %109 = vector.shape_cast %108 : vector<1x32x32xbf16> to vector<32x32xbf16>
    %cst_48 = arith.constant dense<0.000000e+00> : vector<8x32xf32>
    %110 = tpu.matmul %107, %109, %cst_48 {dimension_numbers = #tpu.dot_dimension_numbers<[1], [0], [0], [1], [0, 0, 1, 1], [], []>} : vector<8x32xbf16>, vector<32x32xbf16>, vector<8x32xf32> -> vector<8x32xf32>
    %c0_49 = arith.constant 0 : index
    %c0_50 = arith.constant 0 : index
    %c0_51 = arith.constant 0 : index
    %111 = vector.load %arg12[%c0_49, %c0_50, %c0_51] : memref<1x1x32xf32, #tpu.memory_space<vmem>>, vector<1x1x32xf32>
    %112 = vector.shape_cast %111 : vector<1x1x32xf32> to vector<1x32xf32>
    %113 = vector.broadcast %112 : vector<1x32xf32> to vector<8x32xf32>
    %114 = arith.addf %110, %113 : vector<8x32xf32>
    %115 = arith.addf %114, %3 : vector<8x32xf32>
    %c0_52 = arith.constant 0 : index
    %c0_53 = arith.constant 0 : index
    %c0_54 = arith.constant 0 : index
    %116 = vector.load %arg13[%c0_52, %c0_53, %c0_54] : memref<1x1x32xf32, #tpu.memory_space<vmem>>, vector<1x1x32xf32>
    %117 = vector.shape_cast %116 : vector<1x1x32xf32> to vector<1x32xf32>
    %c0_55 = arith.constant 0 : index
    %c0_56 = arith.constant 0 : index
    %c0_57 = arith.constant 0 : index
    %118 = vector.load %arg14[%c0_55, %c0_56, %c0_57] : memref<1x1x32xf32, #tpu.memory_space<vmem>>, vector<1x1x32xf32>
    %119 = vector.shape_cast %118 : vector<1x1x32xf32> to vector<1x32xf32>
    %cst_58 = arith.constant dense<0.000000e+00> : vector<8xf32>
    %120 = vector.multi_reduction <add>, %115, %cst_58 [1] : vector<8x32xf32> to vector<8xf32>
    %121 = vector.shape_cast %120 : vector<8xf32> to vector<8x1xf32>
    %cst_59 = arith.constant 3.200000e+01 : f32
    %122 = vector.broadcast %cst_59 : f32 to vector<8x1xf32>
    %123 = arith.divf %121, %122 : vector<8x1xf32>
    %124 = vector.broadcast %123 : vector<8x1xf32> to vector<8x32xf32>
    %125 = arith.subf %115, %124 : vector<8x32xf32>
    %126 = arith.mulf %125, %125 : vector<8x32xf32>
    %cst_60 = arith.constant dense<0.000000e+00> : vector<8xf32>
    %127 = vector.multi_reduction <add>, %126, %cst_60 [1] : vector<8x32xf32> to vector<8xf32>
    %128 = vector.shape_cast %127 : vector<8xf32> to vector<8x1xf32>
    %cst_61 = arith.constant 3.200000e+01 : f32
    %129 = vector.broadcast %cst_61 : f32 to vector<8x1xf32>
    %130 = arith.divf %128, %129 : vector<8x1xf32>
    %cst_62 = arith.constant 9.99999974E-6 : f32
    %131 = vector.broadcast %cst_62 : f32 to vector<8x1xf32>
    %132 = arith.addf %130, %131 : vector<8x1xf32>
    %133 = math.rsqrt %132 : vector<8x1xf32>
    %134 = vector.broadcast %133 : vector<8x1xf32> to vector<8x32xf32>
    %135 = arith.mulf %125, %134 : vector<8x32xf32>
    %136 = vector.broadcast %117 : vector<1x32xf32> to vector<8x32xf32>
    %137 = arith.mulf %135, %136 : vector<8x32xf32>
    %138 = vector.broadcast %119 : vector<1x32xf32> to vector<8x32xf32>
    %139 = arith.addf %137, %138 : vector<8x32xf32>
    %140 = arith.truncf %139 : vector<8x32xf32> to vector<8x32xbf16>
    %c0_63 = arith.constant 0 : index
    %c0_64 = arith.constant 0 : index
    %c0_65 = arith.constant 0 : index
    %141 = vector.load %arg15[%c0_63, %c0_64, %c0_65] : memref<1x32x64xbf16, #tpu.memory_space<vmem>>, vector<1x32x64xbf16>
    %142 = vector.shape_cast %141 : vector<1x32x64xbf16> to vector<32x64xbf16>
    %cst_66 = arith.constant dense<0.000000e+00> : vector<8x64xf32>
    %143 = tpu.matmul %140, %142, %cst_66 {dimension_numbers = #tpu.dot_dimension_numbers<[1], [0], [0], [1], [0, 0, 1, 1], [], []>} : vector<8x32xbf16>, vector<32x64xbf16>, vector<8x64xf32> -> vector<8x64xf32>
    %c0_67 = arith.constant 0 : index
    %c0_68 = arith.constant 0 : index
    %c0_69 = arith.constant 0 : index
    %144 = vector.load %arg16[%c0_67, %c0_68, %c0_69] : memref<1x1x64xf32, #tpu.memory_space<vmem>>, vector<1x1x64xf32>
    %145 = vector.shape_cast %144 : vector<1x1x64xf32> to vector<1x64xf32>
    %146 = vector.broadcast %145 : vector<1x64xf32> to vector<8x64xf32>
    %147 = arith.addf %143, %146 : vector<8x64xf32>
    %cst_70 = arith.constant 0.000000e+00 : f32
    %148 = vector.broadcast %cst_70 : f32 to vector<8x64xf32>
    %149 = arith.maximumf %147, %148 : vector<8x64xf32>
    %150 = arith.truncf %149 : vector<8x64xf32> to vector<8x64xbf16>
    %c0_71 = arith.constant 0 : index
    %c0_72 = arith.constant 0 : index
    %c0_73 = arith.constant 0 : index
    %151 = vector.load %arg17[%c0_71, %c0_72, %c0_73] : memref<1x64x32xbf16, #tpu.memory_space<vmem>>, vector<1x64x32xbf16>
    %152 = vector.shape_cast %151 : vector<1x64x32xbf16> to vector<64x32xbf16>
    %cst_74 = arith.constant dense<0.000000e+00> : vector<8x32xf32>
    %153 = tpu.matmul %150, %152, %cst_74 {dimension_numbers = #tpu.dot_dimension_numbers<[1], [0], [0], [1], [0, 0, 1, 1], [], []>} : vector<8x64xbf16>, vector<64x32xbf16>, vector<8x32xf32> -> vector<8x32xf32>
    %c0_75 = arith.constant 0 : index
    %c0_76 = arith.constant 0 : index
    %c0_77 = arith.constant 0 : index
    %154 = vector.load %arg18[%c0_75, %c0_76, %c0_77] : memref<1x1x32xf32, #tpu.memory_space<vmem>>, vector<1x1x32xf32>
    %155 = vector.shape_cast %154 : vector<1x1x32xf32> to vector<1x32xf32>
    %156 = vector.broadcast %155 : vector<1x32xf32> to vector<8x32xf32>
    %157 = arith.addf %153, %156 : vector<8x32xf32>
    %158 = arith.addf %157, %139 : vector<8x32xf32>
    %c0_78 = arith.constant 0 : index
    %c0_79 = arith.constant 0 : index
    %c0_80 = arith.constant 0 : index
    %159 = vector.load %arg19[%c0_78, %c0_79, %c0_80] : memref<1x1x32xf32, #tpu.memory_space<vmem>>, vector<1x1x32xf32>
    %160 = vector.shape_cast %159 : vector<1x1x32xf32> to vector<1x32xf32>
    %c0_81 = arith.constant 0 : index
    %c0_82 = arith.constant 0 : index
    %c0_83 = arith.constant 0 : index
    %161 = vector.load %arg20[%c0_81, %c0_82, %c0_83] : memref<1x1x32xf32, #tpu.memory_space<vmem>>, vector<1x1x32xf32>
    %162 = vector.shape_cast %161 : vector<1x1x32xf32> to vector<1x32xf32>
    %cst_84 = arith.constant dense<0.000000e+00> : vector<8xf32>
    %163 = vector.multi_reduction <add>, %158, %cst_84 [1] : vector<8x32xf32> to vector<8xf32>
    %164 = vector.shape_cast %163 : vector<8xf32> to vector<8x1xf32>
    %cst_85 = arith.constant 3.200000e+01 : f32
    %165 = vector.broadcast %cst_85 : f32 to vector<8x1xf32>
    %166 = arith.divf %164, %165 : vector<8x1xf32>
    %167 = vector.broadcast %166 : vector<8x1xf32> to vector<8x32xf32>
    %168 = arith.subf %158, %167 : vector<8x32xf32>
    %169 = arith.mulf %168, %168 : vector<8x32xf32>
    %cst_86 = arith.constant dense<0.000000e+00> : vector<8xf32>
    %170 = vector.multi_reduction <add>, %169, %cst_86 [1] : vector<8x32xf32> to vector<8xf32>
    %171 = vector.shape_cast %170 : vector<8xf32> to vector<8x1xf32>
    %cst_87 = arith.constant 3.200000e+01 : f32
    %172 = vector.broadcast %cst_87 : f32 to vector<8x1xf32>
    %173 = arith.divf %171, %172 : vector<8x1xf32>
    %cst_88 = arith.constant 9.99999974E-6 : f32
    %174 = vector.broadcast %cst_88 : f32 to vector<8x1xf32>
    %175 = arith.addf %173, %174 : vector<8x1xf32>
    %176 = math.rsqrt %175 : vector<8x1xf32>
    %177 = vector.broadcast %176 : vector<8x1xf32> to vector<8x32xf32>
    %178 = arith.mulf %168, %177 : vector<8x32xf32>
    %179 = vector.broadcast %160 : vector<1x32xf32> to vector<8x32xf32>
    %180 = arith.mulf %178, %179 : vector<8x32xf32>
    %181 = vector.broadcast %162 : vector<1x32xf32> to vector<8x32xf32>
    %182 = arith.addf %180, %181 : vector<8x32xf32>
    %c0_89 = arith.constant 0 : index
    %c0_90 = arith.constant 0 : index
    %183 = vector.load %arg22[%c0_89, %c0_90] : memref<8x32xf32, #tpu.memory_space<vmem>>, vector<8x32xf32>
    tpu.vector_store %arg22[%c0_89, %c0_90], %182 {strides = array<i32>} : memref<8x32xf32, #tpu.memory_space<vmem>>, vector<8x32xf32>,
    %c1_i32 = arith.constant 1 : i32
    %184 = arith.cmpi eq, %arg1, %c1_i32 : i32
    %185 = arith.extui %184 : i1 to i32
    %c0_i32_91 = arith.constant 0 : i32
    %186 = arith.cmpi ne, %185, %c0_i32_91 : i32
    scf.if %186 {
      %c0_92 = arith.constant 0 : index
      %c0_93 = arith.constant 0 : index
      %c0_94 = arith.constant 0 : index
      %187 = vector.load %arg21[%c0_92, %c0_93, %c0_94] : memref<1x8x32xf32, #tpu.memory_space<vmem>>, vector<1x8x32xf32>
      %188 = vector.shape_cast %187 : vector<1x8x32xf32> to vector<8x32xf32>
      %189 = vector.shape_cast %182 : vector<8x32xf32> to vector<1x8x32xf32>
      tpu.vector_store %arg21[%c0_92, %c0_93, %c0_94], %189 {strides = array<i32>} : memref<1x8x32xf32, #tpu.memory_space<vmem>>, vector<1x8x32xf32>,
    } else {
    }
    return
  }
  func.func @transform_0(%arg0: i32, %arg1: i32) -> (i32, i32, i32) {
    %c0_i32 = arith.constant 0 : i32
    %c0_i32_0 = arith.constant 0 : i32
    %c0_i32_1 = arith.constant 0 : i32
    return %arg0, %c0_i32, %c0_i32_0 : i32, i32, i32
  }
  func.func @transform_1(%arg0: i32, %arg1: i32) -> (i32, i32, i32) {
    %c0_i32 = arith.constant 0 : i32
    %c0_i32_0 = arith.constant 0 : i32
    %c0_i32_1 = arith.constant 0 : i32
    return %arg0, %c0_i32, %c0_i32_0 : i32, i32, i32
  }
  func.func @transform_2(%arg0: i32, %arg1: i32) -> (i32, i32, i32) {
    %c0_i32 = arith.constant 0 : i32
    %c0_i32_0 = arith.constant 0 : i32
    %c0_i32_1 = arith.constant 0 : i32
    return %arg0, %c0_i32, %c0_i32_0 : i32, i32, i32
  }
  func.func @transform_3(%arg0: i32, %arg1: i32) -> (i32, i32, i32) {
    %c0_i32 = arith.constant 0 : i32
    %c0_i32_0 = arith.constant 0 : i32
    %c0_i32_1 = arith.constant 0 : i32
    return %arg1, %c0_i32, %c0_i32_0 : i32, i32, i32
  }
  func.func @transform_4(%arg0: i32, %arg1: i32) -> (i32, i32, i32) {
    %c0_i32 = arith.constant 0 : i32
    %c0_i32_0 = arith.constant 0 : i32
    %c0_i32_1 = arith.constant 0 : i32
    return %arg1, %c0_i32, %c0_i32_0 : i32, i32, i32
  }
  func.func @transform_5(%arg0: i32, %arg1: i32) -> (i32, i32, i32) {
    %c0_i32 = arith.constant 0 : i32
    %c0_i32_0 = arith.constant 0 : i32
    %c0_i32_1 = arith.constant 0 : i32
    return %arg1, %c0_i32, %c0_i32_0 : i32, i32, i32
  }
  func.func @transform_6(%arg0: i32, %arg1: i32) -> (i32, i32, i32) {
    %c0_i32 = arith.constant 0 : i32
    %c0_i32_0 = arith.constant 0 : i32
    %c0_i32_1 = arith.constant 0 : i32
    return %arg1, %c0_i32, %c0_i32_0 : i32, i32, i32
  }
  func.func @transform_7(%arg0: i32, %arg1: i32) -> (i32, i32, i32) {
    %c0_i32 = arith.constant 0 : i32
    %c0_i32_0 = arith.constant 0 : i32
    %c0_i32_1 = arith.constant 0 : i32
    return %arg1, %c0_i32, %c0_i32_0 : i32, i32, i32
  }
  func.func @transform_8(%arg0: i32, %arg1: i32) -> (i32, i32, i32) {
    %c0_i32 = arith.constant 0 : i32
    %c0_i32_0 = arith.constant 0 : i32
    %c0_i32_1 = arith.constant 0 : i32
    return %arg1, %c0_i32, %c0_i32_0 : i32, i32, i32
  }
  func.func @transform_9(%arg0: i32, %arg1: i32) -> (i32, i32, i32) {
    %c0_i32 = arith.constant 0 : i32
    %c0_i32_0 = arith.constant 0 : i32
    %c0_i32_1 = arith.constant 0 : i32
    return %arg1, %c0_i32, %c0_i32_0 : i32, i32, i32
  }
  func.func @transform_10(%arg0: i32, %arg1: i32) -> (i32, i32, i32) {
    %c0_i32 = arith.constant 0 : i32
    %c0_i32_0 = arith.constant 0 : i32
    %c0_i32_1 = arith.constant 0 : i32
    return %arg1, %c0_i32, %c0_i32_0 : i32, i32, i32
  }
  func.func @transform_11(%arg0: i32, %arg1: i32) -> (i32, i32, i32) {
    %c0_i32 = arith.constant 0 : i32
    %c0_i32_0 = arith.constant 0 : i32
    %c0_i32_1 = arith.constant 0 : i32
    return %arg1, %c0_i32, %c0_i32_0 : i32, i32, i32
  }
  func.func @transform_12(%arg0: i32, %arg1: i32) -> (i32, i32, i32) {
    %c0_i32 = arith.constant 0 : i32
    %c0_i32_0 = arith.constant 0 : i32
    %c0_i32_1 = arith.constant 0 : i32
    return %arg1, %c0_i32, %c0_i32_0 : i32, i32, i32
  }
  func.func @transform_13(%arg0: i32, %arg1: i32) -> (i32, i32, i32) {
    %c0_i32 = arith.constant 0 : i32
    %c0_i32_0 = arith.constant 0 : i32
    %c0_i32_1 = arith.constant 0 : i32
    return %arg1, %c0_i32, %c0_i32_0 : i32, i32, i32
  }
  func.func @transform_14(%arg0: i32, %arg1: i32) -> (i32, i32, i32) {
    %c0_i32 = arith.constant 0 : i32
    %c0_i32_0 = arith.constant 0 : i32
    %c0_i32_1 = arith.constant 0 : i32
    return %arg1, %c0_i32, %c0_i32_0 : i32, i32, i32
  }
  func.func @transform_15(%arg0: i32, %arg1: i32) -> (i32, i32, i32) {
    %c0_i32 = arith.constant 0 : i32
    %c0_i32_0 = arith.constant 0 : i32
    %c0_i32_1 = arith.constant 0 : i32
    return %arg1, %c0_i32, %c0_i32_0 : i32, i32, i32
  }
  func.func @transform_16(%arg0: i32, %arg1: i32) -> (i32, i32, i32) {
    %c0_i32 = arith.constant 0 : i32
    %c0_i32_0 = arith.constant 0 : i32
    %c0_i32_1 = arith.constant 0 : i32
    return %arg1, %c0_i32, %c0_i32_0 : i32, i32, i32
  }
  func.func @transform_17(%arg0: i32, %arg1: i32) -> (i32, i32, i32) {
    %c0_i32 = arith.constant 0 : i32
    %c0_i32_0 = arith.constant 0 : i32
    %c0_i32_1 = arith.constant 0 : i32
    return %arg1, %c0_i32, %c0_i32_0 : i32, i32, i32
  }
  func.func @transform_18(%arg0: i32, %arg1: i32) -> (i32, i32, i32) {
    %c0_i32 = arith.constant 0 : i32
    %c0_i32_0 = arith.constant 0 : i32
    %c0_i32_1 = arith.constant 0 : i32
    return %arg1, %c0_i32, %c0_i32_0 : i32, i32, i32
  }
  func.func @transform_19(%arg0: i32, %arg1: i32) -> (i32, i32, i32) {
    %c0_i32 = arith.constant 0 : i32
    %c0_i32_0 = arith.constant 0 : i32
    %c0_i32_1 = arith.constant 0 : i32
    return %arg0, %c0_i32, %c0_i32_0 : i32, i32, i32
  }
}

</mosaic_0001>

<bundles_post_ra>
// kernel: transformer_encoder_qkv.1
= control target key start
LH: loop header
LB: loop body
LE: loop exit
PB: predicated region body
PF: predicated region fallthrough
CT: control target
= control target key end

     0   :  { %s2847_s0 = inlined_call_operand.vmem [shape: f32[2,8,32], index: 0, kind: input, shape index: {}]   ;;  %s2848_s1 = inlined_call_operand.vmem [shape: f32[2,8,32], index: 1, kind: input, shape index: {}]   ;;  %s2849_s2 = inlined_call_operand.vmem [shape: f32[2,8,32], index: 2, kind: input, shape index: {}]   ;;  %s2850_s3 = inlined_call_operand.vmem [shape: bf16[2,32,32], index: 3, kind: input, shape index: {}]   ;;  %s2851_s4 = inlined_call_operand.vmem [shape: f32[2,1,32], index: 4, kind: input, shape index: {}]   ;;  %s2852_s5 = inlined_call_operand.vmem [shape: bf16[2,32,32], index: 5, kind: input, shape index: {}]   ;;  %s2853_s6 = inlined_call_operand.hbm [shape: f32[2,1,32], index: 6, kind: input, shape index: {}]   ;;  %s2854_s7 = inlined_call_operand.vmem [shape: bf16[2,32,32], index: 7, kind: input, shape index: {}]   ;;  %s2855_s8 = inlined_call_operand.vmem [shape: f32[2,1,32], index: 8, kind: input, shape index: {}]   ;;  %s2856_s9 = inlined_call_operand.vmem [shape: bf16[2,32,32], index: 9, kind: input, shape index: {}]   ;;  %s2857_s10 = inlined_call_operand.hbm [shape: f32[2,1,32], index: 10, kind: input, shape index: {}]   ;;  %s2858_s11 = inlined_call_operand.vmem [shape: f32[2,1,32], index: 11, kind: input, shape index: {}]   ;;  %s2859_s12 = inlined_call_operand.vmem [shape: f32[2,1,32], index: 12, kind: input, shape index: {}]   ;;  %s2860_s13 = inlined_call_operand.vmem [shape: bf16[2,32,64], index: 13, kind: input, shape index: {}]   ;;  %s2861_s14 = inlined_call_operand.hbm [shape: f32[2,1,64], index: 14, kind: input, shape index: {}]   ;;  %s2862_s15 = inlined_call_operand.vmem [shape: bf16[2,64,32], index: 15, kind: input, shape index: {}]   ;;  %s2863_s16 = inlined_call_operand.hbm [shape: f32[2,1,32], index: 16, kind: input, shape index: {}]   ;;  %s2864_s17 = inlined_call_operand.vmem [shape: f32[2,1,32], index: 17, kind: input, shape index: {}]   ;;  %s2865_s18 = inlined_call_operand.hbm [shape: f32[2,1,32], index: 18, kind: input, shape index: {}]   ;;  %s2866_s19 = inlined_call_operand.vmem [shape: f32[2,8,32], index: 19, kind: output, shape index: {}]  }
   0x1   :  { %2876 = sst [smem:[#allocation24_spill]] %s2847_s0 }
   0x2   :  { %2877 = sst [smem:[#allocation25_spill]] %s2848_s1 }
   0x3   :  { %2878 = sst [smem:[#allocation26_spill]] %s2849_s2 }
   0x4   :  { %2879 = sst [smem:[#allocation27_spill]] %s2850_s3 }
   0x5   :  { %2880 = sst [smem:[#allocation28_spill]] %s2852_s5 }
   0x6   :  { %2881 = sst [smem:[#allocation29_spill]] %s2853_s6 }
   0x7   :  { %2882 = sst [smem:[#allocation30_spill]] %s2854_s7 }
   0x8   :  { %2883 = sst [smem:[#allocation31_spill]] %s2855_s8 }
   0x9   :  { %2884 = sst [smem:[#allocation32_spill]] %s2856_s9 }
   0xa   :  { %2885 = sst [smem:[#allocation33_spill]] %s2857_s10 }
   0xb   :  { %2886 = sst [smem:[#allocation34_spill]] %s2858_s11 }
   0xc   :  { %2887 = sst [smem:[#allocation35_spill]] %s2859_s12 }
   0xd   :  { %2888 = sst [smem:[#allocation36_spill]] %s2860_s13 }
   0xe   :  { %2889 = sst [smem:[#allocation37_spill]] %s2861_s14 }
   0xf   :  { %2890 = sst [smem:[#allocation38_spill]] %s2862_s15 }
  0x10   :  { %2891 = sst [smem:[#allocation39_spill]] %s2863_s16 }
  0x11   :  { %2892 = sst [smem:[#allocation40_spill]] %s2864_s17 }
  0x12   :  { %2893 = sst [smem:[#allocation41_spill]] %s2865_s18 }
  0x13   :  { %2894 = sst [smem:[#allocation42_spill]] %s2866_s19 }
  0x14   :  { %24 = vsyncpa [#allocation4], 0 }
  0x15   :  { %26 = vsyncpa [#allocation4 + $0x1], 0 }
  0x16   :  { %27 = vsyncpa [#allocation6], 0 }
  0x17   :  { %29 = vsyncpa [#allocation6 + $0x1], 0 }
  0x18   :  { %30 = vsyncpa [#allocation9], 0 }
  0x19   :  { %32 = vsyncpa [#allocation9 + $0x1], 0  ;;  %s2503_s0 = smov 0   ;;  %s2505_s30 = smov 0  }
  0x1a   :  { %s2507_s20 = smov 0   ;;  %s2509_s21 = smov 0  }
  0x1b   :  { %s2511_s1 = smov 0   ;;  %s2513_s22 = smov 0  }
  0x1c   :  { %s2515_s2 = smov 0   ;;  %s2517_s23 = smov 0  }
  0x1d LB: > { %2895 = sst [smem:[#allocation14_spill]] %s2370_s30  ;;  %s2868_s24 = sadd.s32 4294967295, %s2394_s23   ;;  %s2394_s23 = sphi %s2517_s23, %s38_s23   ;;  %s2390_s2 = sphi %s2515_s2, %s2949_s2   ;;  %s2386_s22 = sphi %s2513_s22, %s2948_s22   ;;  %s2382_s1 = sphi %s2511_s1, %s2947_s1   ;;  %s2378_s21 = sphi %s2509_s21, %s2946_s21   ;;  %s2374_s20 = sphi %s2507_s20, %s2945_s20   ;;  %s2370_s30 = sphi %s2505_s30, %s2944_s30   ;;  %s2366_s0 = sphi %s2503_s0, %s2943_s0  }
  0x1e   : > { %2896 = sst [smem:[#allocation15_spill]] %s2374_s20  ;;  %s47_s25 = sadd.s32 1, %s2386_s22 }
  0x1f   : > { %2897 = sst [smem:[#allocation16_spill]] %s2386_s22  ;;  %p48_p0 = scmp.ge.s32.totalorder %s47_s25, 2 }
  0x20   : > { %2898 = sst [smem:[#allocation17_spill]] %s2390_s2  ;;  %s50_s3 = sadd.s32 1, %s2390_s2 }
  0x21   : > { %2899 = sst [smem:[#allocation18_spill]] %s2394_s23  ;;  %s213_s26 = sadd.s32 1, %s2374_s20 }
  0x22   : > { %p220_p1 = scmp.ne.s32.totalorder %s2374_s20, %s2370_s30  ;;  %s2951_s25 = smov (%p48_p0, %s47_s25), 0 }
  0x23   : > { %2900 = sst [smem:[#allocation19_spill]] %s2951_s25  ;;  %s2953_s3 = smov (!%p48_p0, %s50_s3), %s2390_s2 }
  0x24   : > { %s210_s27 = ssub.s32 %s2386_s22, %s2951_s25  ;;  %p221_p2 = scmp.eq.s32.totalorder %s2394_s23, 0 }
  0x25   : > { %p52_p3 = scmp.ge.s32.totalorder %s2953_s3, 2  ;;  %p211_p4 = scmp.eq.s32.totalorder %s210_s27, 0 }
  0x26   : > { %p222_p5 = por %p221_p2, %p220_p1  ;;  %p226_p6 = scmp.ne.s32.totalorder %s2370_s30, %s2366_s0 }
  0x27   : > { %s2955_s3 = smov (%p52_p3, %s2953_s3), 0  ;;  %p227_p7 = scmp.eq.s32.totalorder %s2868_s24, 0 }
  0x28   : > { %2901 = sst [smem:[#allocation20_spill]] %s2955_s3  ;;  %p2066_p8 = scmp.lt.s32.totalorder %s2394_s23, 4 }
  0x29   : > { %s2557_s28 = scalar_select %p211_p4, %s2374_s20, %s213_s26  }
  0x2a   : > { %s2563_s29 = sand.u32 1, %s2374_s20   ;;  %p2565_p9 = por %p227_p7, %p226_p6 }
  0x2b   : > { %2902 = sst [smem:[#allocation21_spill]] %s2557_s28  ;;  %s670_s27 = sand.u32 1, %s2394_s23  }
  0x2c   : > { %p2570_p10 = pnand %p2066_p8, %p222_p5  ;;  %s2905_s10 = sld [smem:[#allocation33_spill]] }
  0x2d   : > { %s673_s28 = scalar_lea.vmem [#allocation5], %s2563_s29  ;;  %p1929_p11 = scmp.ge.s32.totalorder %s2394_s23, 1 }
  0x2e   : > { %s680_s20 = sshll.u32 %s673_s28, 4  ;;  %s671_s19 = scalar_lea.sflag [#allocation6], %s670_s27  ;;  %s681_s20 = int_to_ptr.vmem [resolvable:$true] %s680_s20 }
  0x2f   : > { %p770_p12 = scmp.lt.s32.totalorder %s2394_s23, 5  ;;  %s2906_s16 = sld [smem:[#allocation39_spill]] }
  0x30   : > { %s735_s28 = scalar_lea.vmem [#allocation8], %s2563_s29  ;;  %s733_s13 = scalar_lea.sflag [#allocation9], %s670_s27 }
  0x31   : > { %p2587_p13 = pnand %p1929_p11, %p770_p12  ;;  %s2908_s6 = sld [smem:[#allocation29_spill]] }
  0x32   : > { %s676_s24 = scalar_lea.hbm %s2905_s10, %s2386_s22  ;;  %s742_s10 = sshll.u32 %s735_s28, 4  ;;  %s743_s10 = int_to_ptr.vmem [resolvable:$true] %s742_s10 }
  0x33   : > { %s678_s2 = sshll.u32 %s676_s24, 4  ;;  %s2909_s14 = sld [smem:[#allocation37_spill]]  ;;  %s679_s2 = int_to_ptr.hbm [resolvable:$true] %s678_s2 }
  0x34   : > { %2056 = dma.hbm_to_vmem [thread:$0]  (!%p2570_p10), %s679_s2, 16, %s681_s20, %s671_s19  }
  0x35   : > { %s738_s3 = scalar_lea.hbm %s2906_s16, %s2386_s22  ;;  %s634_s16 = scalar_lea.vmem [#allocation3], %s2563_s29 }
  0x36   : > { %s740_s26 = sshll.u32 %s738_s3, 4  ;;  %s641_s12 = sshll.u32 %s634_s16, 4  ;;  %s741_s26 = int_to_ptr.hbm [resolvable:$true] %s740_s26  ;;  %s642_s12 = int_to_ptr.vmem [resolvable:$true] %s641_s12 }
  0x37   : > { %2062 = dma.hbm_to_vmem [thread:$0]  (!%p2570_p10), %s741_s26, 16, %s743_s10, %s733_s13  }
  0x38   : > { %s637_s17 = scalar_lea.hbm %s2908_s6, %s2386_s22  ;;  %s632_s3 = scalar_lea.sflag [#allocation4], %s2563_s29 }
  0x39   : > { %s639_s2 = sshll.u32 %s637_s17, 4  ;;  %s713_s11 = scalar_lea.hbm %s2909_s14, %s2386_s22  ;;  %s640_s2 = int_to_ptr.hbm [resolvable:$true] %s639_s2 }
  0x3a   : > { %2053 = dma.hbm_to_vmem [thread:$0]  (!%p2570_p10), %s640_s2, 16, %s642_s12, %s632_s3  }
  0x3b   : > { %s715_s10 = sshll.u32 %s713_s11, 4  ;;  %s710_s26 = scalar_lea.vmem [#allocation7], %s2563_s29  ;;  %s716_s10 = int_to_ptr.hbm [resolvable:$true] %s715_s10 }
  0x3c   : > { %s717_s9 = sshll.u32 %s710_s26, 4  ;;  %s2910_s18 = sld [smem:[#allocation41_spill]]  ;;  %s718_s9 = int_to_ptr.vmem [resolvable:$true] %s717_s9 }
  0x3d   : > { %2059 = dma.hbm_to_vmem [thread:$0]  (!%p2570_p10), %s716_s10, 16, %s718_s9, %s671_s19  }
  0x3e   : > { %s758_s6 = scalar_lea.vmem [#allocation10], %s2563_s29 }
  0x3f   : > { %s765_s8 = sshll.u32 %s758_s6, 4  ;;  %s766_s8 = int_to_ptr.vmem [resolvable:$true] %s765_s8 }
  0x40   : > { %774 = sbr.rel (%p2587_p13) target bundleno = 1974 (0x7b6), region = 96 }
  0x42   : > { %s761_s16 = scalar_lea.hbm %s2910_s18, %s2386_s22 }
  0x43   : > { %s763_s17 = sshll.u32 %s761_s16, 4  ;;  %s764_s17 = int_to_ptr.hbm [resolvable:$true] %s763_s17 }
  0x44   : > { %2065 = dma.hbm_to_vmem [thread:$0]  (!%p2570_p10), %s764_s17, 16, %s766_s8, %s733_s13  }
  0x45   : > { %s2619_s11 = sand.u32 1, %s2370_s30  }
  0x46   : > { %s777_s9 = scalar_lea.sflag [#allocation4], %s2619_s11 }
  0x47   : > { %2353 = dma.done.wait (%p2565_p9), %s777_s9, 16  }
  0x48   : > { %2355 = vsyncadd (%p2565_p9), %s777_s9, 4294967280  ;;  %s2911_s6 = sadd.s32 4294967295, %s2394_s23  }
  0x49   : > { %s785_s8 = sand.u32 1, %s2911_s6  }
  0x4a   : > { %s786_s13 = scalar_lea.sflag [#allocation6], %s785_s8 }
  0x4b   : > { %2357 = dma.done.wait (%p2565_p9), %s786_s13, 32  }
  0x4c   : > { %2359 = vsyncadd (%p2565_p9), %s786_s13, 4294967264  ;;  %s804_s0 = scalar_lea.sflag [#allocation9], %s785_s8 }
  0x4d   : > { %2361 = dma.done.wait (%p2565_p9), %s804_s0, 32  }
  0x4e   : > { %2363 = vsyncadd (%p2565_p9), %s804_s0, 4294967264  ;;  %p942_p0 = scmp.lt.s32.totalorder %s2382_s1, 1  ;;  %p954_p1 = scmp.lt.s32.totalorder %s2378_s21, 1 }
  0x4f   : > { %s2912_s27 = sld [smem:[#allocation24_spill]]  ;;  %p1946_p2 = scmp.ne.s32.totalorder %s2378_s21, 0 }
  0x50   : > { %s2957_s1 = smov (!%p942_p0, %s2382_s1), 1  ;;  %s2913_s15 = sld [smem:[#allocation25_spill]] }
  0x51   : > { %s2644_s2 = scalar_select %p954_p1, %s2378_s21, 1 }
  0x52   : > { %s2646_s3 = sshll.u32 %s2957_s1, 3  ;;  %s2914_s6 = sld [smem:[#allocation26_spill]] }
  0x53   : > { %s2020_s1 = sshll.u32 %s2644_s2, 4  ;;  %s2915_s24 = sld [smem:[#allocation27_spill]] }
  0x54   : > { %s2916_s5 = sld [smem:[#allocation28_spill]]  ;;  %s2025_s17 = sshll.u32 %s2644_s2, 5 }
  0x55   : > { %s945_s10 = scalar_lea.vmem %s2912_s27, %s2646_s3  ;;  %s2917_s7 = sld [smem:[#allocation30_spill]] }
  0x56   : > { %s949_s16 = scalar_lea.vmem %s2913_s15, %s2646_s3  ;;  %s2925_s18 = sld [smem:[#allocation38_spill]] }
  0x57   : > { %s2927_s30 = sld [smem:[#allocation42_spill]] }
  0x58   : > { %s953_s8 = scalar_lea.vmem %s2914_s6, %s2646_s3 }
  0x59   : > { %s958_s29 = scalar_lea.vmem %s2915_s24, %s2020_s1  ;;  %s2920_s24 = sld [smem:[#allocation32_spill]] }
  0x5a   : > { %s966_s26 = scalar_lea.vmem %s2916_s5, %s2020_s1  ;;  %s2923_s5 = sld [smem:[#allocation35_spill]] }
  0x5b   : > { %s2674_s14 = scalar_lea.vmem %s2917_s7, %s2020_s1  ;;  %s2924_s7 = sld [smem:[#allocation36_spill]] }
  0x5c   : > { %2918 = sst [smem:[#allocation22_spill]] %s2674_s14  ;;  %s2702_s22 = scalar_lea.vmem %s2925_s18, %s2025_s17 }
  0x5d   : > { %s1002_s12 = scalar_lea.vmem %s2927_s30, %s2646_s3 }
  0x5f   : > { %s2683_s0 = scalar_lea.vmem %s2920_s24, %s2020_s1 }
  0x60   : > { %2921 = sst [smem:[#allocation23_spill]] %s2683_s0  ;;  %s985_s23 = scalar_lea.vmem %s2923_s5, %s2644_s2 }
  0x61   : > { %s2696_s14 = scalar_lea.vmem %s2924_s7, %s2020_s1  ;;  %s2926_s0 = sld [smem:[#allocation40_spill]] }
  0x62   : > { %s815_s5 = scalar_lea.vmem [#allocation10], %s2619_s11 }
  0x63   : > { %1007 = sbr.rel (%p1946_p2) target bundleno = 106 (0x6a), region = 120 }
  0x67   : > { %s998_s25 = scalar_lea.vmem %s2926_s0, %s2644_s2 }
  0x68   : > { %v1008_v0 = vld [vmem:[%s953_s8] sm:$0xff]  ;;  %vm1009_vm0 = vcmask 261120  }
  0x69   : > { %1010 = vst.msk [vmem:[#allocation2] sm:$0xff] %vm1009_vm0, %v1008_v0 }
  0x6a PF: > { %v2027_v1 = vld [vmem:[%s958_s29 + $0x8] sm:$0xff]  ;;  %v2026_v3 = vld [vmem:[%s958_s29] sm:$0xff]  ;;  %vm1034_vm1 = vcmask 261120   ;;  %s2928_s30 = scalar_lea.vmem %s2851_s4, %s2644_s2  ;;  %s2929_s29 = scalar_lea.vmem [#allocation3], %s2619_s11  ;;  %vm1130_vm2 = vcmask 64512   ;;  %vm1178_vm3 = vcmask 1043456  }
  0x6b   : > { %v2029_v2 = vld [vmem:[%s966_s26 + $0x8] sm:$0xff]  ;;  %v2028_v4 = vld [vmem:[%s966_s26] sm:$0xff]  ;;  %1044 = vmatpush.bf16.msra.mxu0 %v2027_v1  ;;  %s2398_s8 = smov 104   ;;  %s2930_s1 = sld [smem:[#allocation22_spill]] }
  0x6c   : > { %v1012_v5 = vld [vmem:[%s945_s10] sm:$0xff]  ;;  %1083 = vmatpush.bf16.msra.mxu1 %v2029_v2  ;;  %s2396_s10 = smov 112   ;;  %s2931_s27 = sld [smem:[#allocation31_spill]] }
  0x6d   : > { %v1052_v6 = vld [vmem:[%s949_s16] sm:$0xff]  ;;  %v1013_v7 = vpack.c.bf16 %v1012_v5, %v1012_v5  ;;  %s2397_s16 = smov 120   ;;  %s2933_s15 = sld [smem:[#allocation23_spill]] }
  0x6e   : > { %v1053_v8 = vpack.c.bf16 %v1052_v6, %v1052_v6  ;;  %v2138_v9 = vld [vmem:[%s2928_s30] ss:$0 sm:$0xff]  ;;  %s2399_s17 = smov 8   ;;  %s2400_s9 = smov 24  }
  0x6f   : > { %1045 = vmatpush.bf16.msra.mxu0 %v2026_v3  ;;  %v2139_v10 = vld [vmem:[%s2929_s29] ss:$0 sm:$0xff]  ;;  %s2401_s6 = smov 16   ;;  %s2934_s13 = scalar_lea.vmem [#allocation5], %s2619_s11 }
  0x70   : > { %1084 = vmatpush.bf16.msra.mxu1 %v2028_v4  ;;  %v2740_v35 = vld [vmem:[#allocation2] sm:$0xff]  ;;  %s2935_s19 = sld [smem:[#allocation34_spill]]  ;;  %s2938_s29 = scalar_lea.vmem [#allocation7], %s2619_s11 }
  0x71   : > { %v2031_v33 = vld [vmem:[%s2930_s1 + $0x8] sm:$0xff]  ;;  %v2030_v34 = vld [vmem:[%s2930_s1] sm:$0xff]  ;;  %v1090_v36 = vpack.c.bf16 %v2740_v35, %v2740_v35  ;;  %p2017_p3 = scmp.ne.s32.totalorder %s2378_s21, 1 }
  0x72   : > { %1955 = vmatmul.msk.bf16.vlgmr.msra.gmra.mxu0 %vm1034_vm1, %v1013_v7  ;;  %1120 = vmatpush.bf16.msra.mxu2 %v2031_v33  ;;  %s2932_s20 = scalar_lea.vmem %s2931_s27, %s2644_s2 }
  0x73   : > { %1964 = vmatmul.msk.bf16.vlgmr.msra.gmra.mxu1 %vm1034_vm1, %v1053_v8  ;;  %v2140_v51 = vld [vmem:[%s2932_s20] ss:$0 sm:$0xff] }
  0x76   : > { %1121 = vmatpush.bf16.msra.mxu2 %v2030_v34  ;;  %s2936_s28 = scalar_lea.vmem %s2935_s19, %s2644_s2 }
  0x79   : > { %1973 = vmatmul.msk.bf16.vlgmr.msra.gmra.mxu2 %vm1034_vm1, %v1090_v36 }
  0xef   : > { %v1047_v11 = vpop.f32.mrf.mxu0 }
  0xf0   : > { %v1086_v12 = vpop.f32.mrf.mxu1  ;;  %v1048_v13 = vadd.f32 %v2138_v9, %v1047_v11 }
  0xf1   : > { %v1087_v14 = vadd.f32 %v2139_v10, %v1086_v12 }
  0xf2   : > { %v1051_v15 = vmul.f32 0.35355338, %v1048_v13 }
  0xf3   : > { %v1128_v16 = vpack.c.bf16 %v1087_v14, %v1087_v14 }
  0xf4   : > { %v1127_v17 = vpack.c.bf16 %v1051_v15, %v1051_v15 }
  0xf5   : > { %1269 = vrot.lane.b32.xlu1 %v1128_v16, %s2396_s10  ;;  %1199 = vrot.lane.b32.xlu0 %v1128_v16, %s2397_s16  ;;  %v1135_v18 = vsel %vm1130_vm2, %v1128_v16, 0 }
  0xf6   : > { %1144 = vmatpush.bf16.xpose.msra.mxu3 %v1135_v18  ;;  %1267 = vrot.lane.b32.xlu2 %v1127_v17, %s2396_s10 }
  0xf7   : > { %v1049_v19 = vpop.f32.mrf.mxu0 }
  0xf8   : > { %v1088_v20 = vpop.f32.mrf.mxu1 }
  0xfc   : > { %v1123_v52 = vpop.f32.mrf.mxu2 }
  0xfd   : > { %1338 = vrot.lane.b32.xlu1 %v1128_v16, %s2398_s8  ;;  %1196 = vrot.lane.b32.xlu0 %v1127_v17, %s2397_s16  ;;  %v1124_v54 = vadd.f32 %v2140_v51, %v1123_v52 }
  0xfe   : > { %1974 = vmatmul.msk.bf16.vlgmr.msra.gmra.mxu3 %vm1130_vm2, %v1127_v17  ;;  %1336 = vrot.lane.b32.xlu2 %v1127_v17, %s2398_s8 }
  0xff   : > { %v1129_v57 = vpack.c.bf16 %v1124_v54, %v1124_v54 }
 0x101   : > { %v1180_v58 = vsel %vm1178_vm3, %v1129_v57, 0 }
 0x102   : > { %1189 = vmatpush.bf16.msrb.mxu0 %v1180_v58 }
 0x104   : > { %v1125_v59 = vpop.f32.mrf.mxu2 }
 0x150   : > { %v1268_v25 = vpop.permute.xlu2 %1267 }
 0x158   : > { %v1337_v29 = vpop.permute.xlu2 %1336 }
 0x167   : > { %v1270_v21 = vpop.permute.xlu1 %1269  ;;  %v1200_v22 = vpop.permute.xlu0 %1199 }
 0x168   : > { %v1205_v23 = vsel %vm1130_vm2, %v1200_v22, 0  ;;  %v1275_v24 = vsel %vm1130_vm2, %v1270_v21, 0 }
 0x169   : > { %1214 = vmatpush.bf16.xpose.msrb.mxu1 %v1205_v23  ;;  %1284 = vmatpush.bf16.xpose.msrb.mxu3 %v1275_v24 }
 0x16f   : > { %v1339_v26 = vpop.permute.xlu1 %1338  ;;  %v1197_v27 = vpop.permute.xlu0 %1196 }
 0x170   : > { %v1344_v28 = vsel %vm1130_vm2, %v1339_v26, 0  ;;  %1976 = vmatmul.msk.bf16.vlgmr.msrb.gmra.mxu1 %vm1130_vm2, %v1197_v27  ;;  %1978 = vmatmul.msk.bf16.vlgmr.msrb.gmra.mxu3 %vm1130_vm2, %v1268_v25 }
 0x171   : > { %1353 = vmatpush.bf16.xpose.msra.mxu1 %v1344_v28 }
 0x180   : > { %1980 = vmatmul.msk.bf16.vlgmr.msra.gmra.mxu1 %vm1130_vm2, %v1337_v29 }
 0x181   : > { %v1146_v30 = vpop.f32.mrf.mxu3 }
 0x182   : > { %v1150_v31 = vsel %vm1130_vm2, %v1146_v30, -inf }
 0x183   : > { %1151 = vmax.xlane.f32.xlu1 %v1150_v31 }
 0x189   : > { %v1148_v32 = vpop.f32.mrf.mxu3 }
 0x1ed   : > { %v1216_v37 = vpop.f32.mrf.mxu1 }
 0x1ee   : > { %v1220_v38 = vsel %vm1130_vm2, %v1216_v37, -inf }
 0x1ef   : > { %1221 = vmax.xlane.f32.xlu0 %v1220_v38 }
 0x1f3   : > { %v1286_v39 = vpop.f32.mrf.mxu3 }
 0x1f4   : > { %v1290_v50 = vsel %vm1130_vm2, %v1286_v39, -inf }
 0x1f5   : > { %v1218_v40 = vpop.f32.mrf.mxu1 }
 0x1f6   : > { %v1152_v41 = vpop.xlane.xlu1 %1151 }
 0x1f7   : > { %v1153_v42 = vsub.f32 %v1146_v30, %v1152_v41 }
 0x1f9   : > { %v1154_v43 = vmul.f32 1.442695, %v1153_v42 }
 0x1fb   : > { %2148 = vpow2.f32 %v1154_v43  ;;  %v1288_v44 = vpop.f32.mrf.mxu3 }
 0x1fd   : > { %v1355_v45 = vpop.f32.mrf.mxu1 }
 0x1fe   : > { %v1359_v46 = vsel %vm1130_vm2, %v1355_v45, -inf }
 0x1ff   : > { %1360 = vmax.xlane.f32.xlu2 %v1359_v46 }
 0x201   : > { %v2149_v47 = vpop.eup %2148 }
 0x202   : > { %v1156_v48 = vsel %vm1130_vm2, %v2149_v47, 0.0 }
 0x203   : > { %1157 = vadd.xlane.f32.xlu1 %v1156_v48 }
 0x205   : > { %v1357_v49 = vpop.f32.mrf.mxu1 }
 0x207   : > { %1291 = vmax.xlane.f32.xlu2 %v1290_v50 }
 0x262   : > { %v1222_v53 = vpop.xlane.xlu0 %1221 }
 0x263   : > { %v1223_v55 = vsub.f32 %v1216_v37, %v1222_v53 }
 0x265   : > { %v1224_v56 = vmul.f32 1.442695, %v1223_v55 }
 0x267   : > { %2150 = vpow2.f32 %v1224_v56 }
 0x26d   : > { %v2151_v60 = vpop.eup %2150 }
 0x26e   : > { %v1226_v61 = vsel %vm1130_vm2, %v2151_v60, 0.0 }
 0x26f   : > { %1227 = vadd.xlane.f32.xlu0 %v1226_v61 }
 0x272   : > { %v1361_v62 = vpop.xlane.xlu2 %1360 }
 0x273   : > { %v1362_v63 = vsub.f32 %v1355_v45, %v1361_v62 }
 0x275   : > { %v1363_v0 = vmul.f32 1.442695, %v1362_v63 }
 0x276   : > { %v1158_v1 = vpop.xlane.xlu1 %1157 }
 0x277   : > { %2152 = vpow2.f32 %v1363_v0  ;;  %v1170_v10 = vand.u32 2147483648, %v1158_v1  ;;  %v1168_v12 = vand.u32 2147483647, %v1158_v1  ;;  %vm1164_vm5 = vweird.f32 %v1158_v1 }
 0x278   : > { %2154 = vrcp.f32 %v1158_v1 }
 0x279   : > { %v1171_v15 = vor.u32 1.1754944e-38, %v1170_v10  ;;  %vm1169_vm7 = vcmp.eq.f32.partialorder %v1168_v12, 8.507059e+37  ;;  %v2032_v12 = vld [vmem:[%s2933_s15] sm:$0xff] }
 0x27a   : > { %v1292_v2 = vpop.xlane.xlu2 %1291 }
 0x27b   : > { %v1293_v3 = vsub.f32 %v1286_v39, %v1292_v2 }
 0x27d   : > { %v2756_v4 = vpop.eup %2152  ;;  %v1294_v5 = vmul.f32 1.442695, %v1293_v3 }
 0x27e   : > { %v2155_v6 = vpop.eup %2154  ;;  %v1365_v7 = vsel %vm1130_vm2, %v2756_v4, 0.0 }
 0x27f   : > { %v1160_v8 = vmul.f32 %v2155_v6, %v1158_v1  ;;  %2156 = vpow2.f32 %v1294_v5  ;;  %1366 = vadd.xlane.f32.xlu2 %v1365_v7  ;;  %vm1165_vm4 = vweird.f32 %v2155_v6 }
 0x280   : > { %vm1166_vm6 = vmor %vm1164_vm5, %vm1165_vm4 }
 0x281   : > { %v1161_v9 = vsub.f32 1.0, %v1160_v8 }
 0x283   : > { %v1162_v11 = vmul.f32 %v2155_v6, %v1161_v9  ;;  %1246 = vrot.lane.b32.xlu0 %v1129_v57, %s2397_s16 }
 0x285   : > { %v2761_v13 = vpop.eup %2156  ;;  %v1163_v14 = vadd.f32 %v2155_v6, %v1162_v11  ;;  %v2033_v11 = vld [vmem:[%s2933_s15 + $0x8] sm:$0xff] }
 0x286   : > { %v1296_v16 = vsel %vm1130_vm2, %v2761_v13, 0.0  ;;  %1452 = vmatpush.bf16.msra.mxu3 %v2033_v11 }
 0x287   : > { %1297 = vadd.xlane.f32.xlu1 %v1296_v16  ;;  %v1167_v17 = vsel %vm1166_vm6, %v2155_v6, %v1163_v14 }
 0x288   : > { %v1172_v18 = vsel %vm1169_vm7, %v1171_v15, %v1167_v17  ;;  %vm1420_vm7 = vcmask 195584  }
 0x289   : > { %v1173_v19 = vmul.f32 %v2149_v47, %v1172_v18 }
 0x28a   : > { %1453 = vmatpush.bf16.msra.mxu3 %v2032_v12 }
 0x28b   : > { %v1174_v20 = vpack.c.bf16 %v1173_v19, %v1173_v19 }
 0x28d   : > { %1975 = vmatmul.msk.bf16.vlgmr.msrb.gmra.mxu0 %vm1130_vm2, %v1174_v20  ;;  %v2141_v20 = vld [vmem:[%s2934_s13] ss:$0 sm:$0xff] }
 0x297   : > { %1384 = vrot.lane.b32.xlu2 %v1129_v57, %s2398_s8 }
 0x2a0   : > { %1315 = vrot.lane.b32.xlu1 %v1129_v57, %s2396_s10 }
 0x2e2   : > { %v1228_v21 = vpop.xlane.xlu0 %1227 }
 0x2e3   : > { %2158 = vrcp.f32 %v1228_v21  ;;  %v1240_v26 = vand.u32 2147483648, %v1228_v21  ;;  %v1238_v27 = vand.u32 2147483647, %v1228_v21  ;;  %vm1234_vm9 = vweird.f32 %v1228_v21 }
 0x2e5   : > { %v1241_v29 = vor.u32 1.1754944e-38, %v1240_v26  ;;  %vm1239_vm11 = vcmp.eq.f32.partialorder %v1238_v27, 8.507059e+37  ;;  %v2402_v26 = vmov 32.0  }
 0x2e9   : > { %v2159_v22 = vpop.eup %2158 }
 0x2ea   : > { %v1230_v23 = vmul.f32 %v2159_v22, %v1228_v21  ;;  %vm1235_vm8 = vweird.f32 %v2159_v22 }
 0x2eb   : > { %vm1236_vm10 = vmor %vm1234_vm9, %vm1235_vm8 }
 0x2ec   : > { %v1231_v24 = vsub.f32 1.0, %v1230_v23 }
 0x2ee   : > { %v1232_v25 = vmul.f32 %v2159_v22, %v1231_v24 }
 0x2f0   : > { %v1233_v28 = vadd.f32 %v2159_v22, %v1232_v25 }
 0x2f2   : > { %v1367_v30 = vpop.xlane.xlu2 %1366  ;;  %v1237_v31 = vsel %vm1236_vm10, %v2159_v22, %v1233_v28 }
 0x2f3   : > { %2160 = vrcp.f32 %v1367_v30  ;;  %v1242_v32 = vsel %vm1239_vm11, %v1241_v29, %v1237_v31  ;;  %v1379_v44 = vand.u32 2147483648, %v1367_v30  ;;  %v1377_v46 = vand.u32 2147483647, %v1367_v30 }
 0x2f4   : > { %v1243_v34 = vmul.f32 %v2151_v60, %v1242_v32  ;;  %vm1373_vm13 = vweird.f32 %v1367_v30  ;;  %vm1574_vm11 = vcmask 523264  }
 0x2f5   : > { %v1247_v33 = vpop.permute.xlu0 %1246  ;;  %v1380_v49 = vor.u32 1.1754944e-38, %v1379_v44  ;;  %vm1378_vm15 = vcmp.eq.f32.partialorder %v1377_v46, 8.507059e+37 }
 0x2f6   : > { %v1252_v36 = vsel %vm1178_vm3, %v1247_v33, 0  ;;  %v1244_v37 = vpack.c.bf16 %v1243_v34, %v1243_v34 }
 0x2f7   : > { %1261 = vmatpush.bf16.msrb.mxu2 %v1252_v36 }
 0x2f9   : > { %v2161_v38 = vpop.eup %2160 }
 0x2fa   : > { %v1369_v39 = vmul.f32 %v2161_v38, %v1367_v30  ;;  %v1298_v40 = vpop.xlane.xlu1 %1297  ;;  %v1385_v41 = vpop.permute.xlu2 %1384  ;;  %1977 = vmatmul.msk.bf16.vlgmr.msrb.gmra.mxu2 %vm1130_vm2, %v1244_v37  ;;  %vm1374_vm12 = vweird.f32 %v2161_v38 }
 0x2fb   : > { %2162 = vrcp.f32 %v1298_v40  ;;  %v1390_v43 = vsel %vm1178_vm3, %v1385_v41, 0  ;;  %vm1375_vm14 = vmor %vm1373_vm13, %vm1374_vm12  ;;  %v1310_v57 = vand.u32 2147483648, %v1298_v40  ;;  %vm1304_vm4 = vweird.f32 %v1298_v40 }
 0x2fc   : > { %v1370_v42 = vsub.f32 1.0, %v1369_v39  ;;  %1399 = vmatpush.bf16.msra.mxu2 %v1390_v43  ;;  %v1308_v59 = vand.u32 2147483647, %v1298_v40  ;;  %2164 = vrcp.f32 %v2402_v26  ;;  %v2034_v39 = vld [vmem:[%s2696_s14] sm:$0xff]  ;;  %v2038_v43 = vld [vmem:[%s2702_s22 + $0x10] sm:$0xff] }
 0x2fd   : > { %v1311_v62 = vor.u32 1.1754944e-38, %v1310_v57 }
 0x2fe   : > { %v1371_v45 = vmul.f32 %v2161_v38, %v1370_v42  ;;  %vm1309_vm6 = vcmp.eq.f32.partialorder %v1308_v59, 8.507059e+37  ;;  %v2036_v59 = vld [vmem:[%s2702_s22] sm:$0xff] }
 0x300   : > { %v1372_v47 = vadd.f32 %v2161_v38, %v1371_v45 }
 0x301   : > { %v2163_v48 = vpop.eup %2162 }
 0x302   : > { %v1376_v50 = vsel %vm1375_vm14, %v2161_v38, %v1372_v47  ;;  %v1300_v51 = vmul.f32 %v2163_v48, %v1298_v40  ;;  %vm1305_vm0 = vweird.f32 %v2163_v48  ;;  %v2165_v27 = vpop.eup %2164  ;;  %v2035_v38 = vld [vmem:[%s2696_s14 + $0x8] sm:$0xff]  ;;  %v2039_v40 = vld [vmem:[%s2702_s22 + $0x18] sm:$0xff] }
 0x303   : > { %v1381_v52 = vsel %vm1378_vm15, %v1380_v49, %v1376_v50  ;;  %vm1306_vm5 = vmor %vm1304_vm4, %vm1305_vm0  ;;  %v1466_v28 = vmul.f32 32.0, %v2165_v27  ;;  %1582 = vmatpush.bf16.msrb.mxu1 %v2039_v40 }
 0x304   : > { %v1382_v53 = vmul.f32 %v2756_v4, %v1381_v52  ;;  %v1301_v54 = vsub.f32 1.0, %v1300_v51  ;;  %v2142_v51 = vld [vmem:[%s2936_s28] ss:$0 sm:$0xff] }
 0x305   : > { %v1467_v29 = vsub.f32 1.0, %v1466_v28 }
 0x306   : > { %v1302_v55 = vmul.f32 %v2163_v48, %v1301_v54  ;;  %v1383_v58 = vpack.c.bf16 %v1382_v53, %v1382_v53  ;;  %v2143_v53 = vld [vmem:[%s985_s23] ss:$0 sm:$0xff]  ;;  %s2939_s23 = scalar_lea.vmem [#allocation8], %s2619_s11 }
 0x307   : > { %v1468_v30 = vmul.f32 %v2165_v27, %v1467_v29  ;;  %1583 = vmatpush.bf16.msrb.mxu1 %v2038_v43 }
 0x308   : > { %v1303_v56 = vadd.f32 %v2163_v48, %v1302_v55 }
 0x309   : > { %v1469_v31 = vadd.f32 %v2165_v27, %v1468_v30 }
 0x30a   : > { %v1191_v60 = vpop.f32.mrf.mxu0  ;;  %1981 = vmatmul.msk.bf16.vlgmr.msra.gmra.mxu2 %vm1130_vm2, %v1383_v58  ;;  %v1307_v61 = vsel %vm1306_vm5, %v2163_v48, %v1303_v56  ;;  %v2037_v58 = vld [vmem:[%s2702_s22 + $0x8] sm:$0xff] }
 0x30b   : > { %v1312_v63 = vsel %vm1309_vm6, %v1311_v62, %v1307_v61  ;;  %1584 = vmatpush.bf16.msrb.mxu1 %v2037_v58 }
 0x30c   : > { %v1313_v0 = vmul.f32 %v2761_v13, %v1312_v63 }
 0x30e   : > { %v1314_v4 = vpack.c.bf16 %v1313_v0, %v1313_v0 }
 0x30f   : > { %1585 = vmatpush.bf16.msrb.mxu1 %v2036_v59 }
 0x312   : > { %v1193_v1 = vpop.f32.mrf.mxu0  ;;  %v1316_v2 = vpop.permute.xlu1 %1315 }
 0x313   : > { %v1321_v3 = vsel %vm1178_vm3, %v1316_v2, 0  ;;  %vm1418_vm3 = vcmask 130048   ;;  %v2145_v2 = vld [vmem:[%s2939_s23] ss:$0 sm:$0xff] }
 0x314   : > { %1330 = vmatpush.bf16.msra.mxu0 %v1321_v3 }
 0x317   : > { %1979 = vmatmul.msk.bf16.vlgmr.msra.gmra.mxu0 %vm1130_vm2, %v1314_v4 }
 0x318   : > { %1529 = vmatpush.bf16.msrb.mxu0 %v2035_v38 }
 0x31c   : > { %1530 = vmatpush.bf16.msrb.mxu0 %v2034_v39 }
 0x37d   : > { %v1263_v5 = vpop.f32.mrf.mxu2 }
 0x37e   : > { %1406 = vrot.lane.b32.xlu0 %v1263_v5, %s2399_s17 }
 0x385   : > { %v1265_v6 = vpop.f32.mrf.mxu2 }
 0x38d   : > { %v1401_v7 = vpop.f32.mrf.mxu2 }
 0x38e   : > { %1414 = vrot.lane.b32.xlu2 %v1401_v7, %s2400_s9 }
 0x394   : > { %v1332_v8 = vpop.f32.mrf.mxu0 }
 0x395   : > { %v1403_v9 = vpop.f32.mrf.mxu2  ;;  %1410 = vrot.lane.b32.xlu0 %v1332_v8, %s2401_s6 }
 0x39c   : > { %v1334_v10 = vpop.f32.mrf.mxu0 }
 0x3e8   : > { %v1415_v16 = vpop.permute.xlu2 %1414 }
 0x3f0   : > { %v1407_v13 = vpop.permute.xlu0 %1406 }
 0x3f1   : > { %v1417_v14 = vsel %vm1130_vm2, %v1191_v60, %v1407_v13  ;;  %vm1470_vm2 = vweird.f32 %v2165_v27  ;;  %v2144_v60 = vld [vmem:[%s2938_s29] ss:$0 sm:$0xff] }
 0x3f2   : > { %v1471_v32 = vsel %vm1470_vm2, %v2165_v27, %v1469_v31 }
 0x407   : > { %v1411_v15 = vpop.permute.xlu0 %1410 }
 0x408   : > { %v1419_v17 = vsel %vm1418_vm3, %v1417_v14, %v1411_v15 }
 0x409   : > { %v1421_v18 = vsel %vm1420_vm7, %v1419_v17, %v1415_v16 }
 0x40a   : > { %v1422_v19 = vpack.c.bf16 %v1421_v18, %v1421_v18 }
 0x40c   : > { %1990 = vmatmul.msk.bf16.vlgmr.msra.gmra.mxu3 %vm1034_vm1, %v1422_v19 }
 0x48f   : > { %v1455_v21 = vpop.f32.mrf.mxu3 }
 0x490   : > { %v1456_v22 = vadd.f32 %v2141_v20, %v1455_v21 }
 0x492   : > { %v1459_v23 = vadd.f32 %v1456_v22, %v2740_v35  ;;  %v2146_v22 = vld [vmem:[%s998_s25] ss:$0 sm:$0xff] }
 0x494   : > { %v1462_v24 = vsel %vm1034_vm1, %v1459_v23, 0.0 }
 0x495   : > { %1463 = vadd.xlane.f32.xlu1 %v1462_v24  ;;  %v2147_v24 = vld [vmem:[%s815_s5] ss:$0 sm:$0xff] }
 0x497   : > { %v1457_v25 = vpop.f32.mrf.mxu3 }
 0x508   : > { %v1464_v33 = vpop.xlane.xlu1 %1463 }
 0x509   : > { %v1472_v34 = vmul.f32 %v1471_v32, %v1464_v33 }
 0x50b   : > { %v1473_v35 = vsub.f32 %v1459_v23, %v1472_v34 }
 0x50d   : > { %v1474_v36 = vmul.f32 %v1473_v35, %v1473_v35 }
 0x50f   : > { %v1475_v37 = vsel %vm1034_vm1, %v1474_v36, 0.0 }
 0x510   : > { %1476 = vadd.xlane.f32.xlu0 %v1475_v37 }
 0x583   : > { %v1477_v41 = vpop.xlane.xlu0 %1476 }
 0x584   : > { %v1478_v42 = vmul.f32 %v1477_v41, %v1471_v32 }
 0x586   : > { %v1479_v44 = vadd.f32 1e-05, %v1478_v42 }
 0x588   : > { %2166 = vrsqrt.f32 %v1479_v44  ;;  %vm1486_vm9 = vweird.f32 %v1479_v44 }
 0x58e   : > { %v2167_v45 = vpop.eup %2166 }
 0x58f   : > { %v1481_v46 = vmul.f32 %v2167_v45, %v1479_v44  ;;  %vm1487_vm8 = vweird.f32 %v2167_v45 }
 0x590   : > { %vm1488_vm10 = vmor %vm1486_vm9, %vm1487_vm8 }
 0x591   : > { %v1482_v47 = vmul.f32 %v2167_v45, %v1481_v46 }
 0x593   : > { %v1483_v48 = vmul.f32 0.5, %v1482_v47 }
 0x595   : > { %v1484_v49 = vsub.f32 1.5, %v1483_v48 }
 0x597   : > { %v1485_v50 = vmul.f32 %v2167_v45, %v1484_v49 }
 0x599   : > { %v1489_v52 = vsel %vm1488_vm10, %v2167_v45, %v1485_v50 }
 0x59a   : > { %v1490_v54 = vmul.f32 %v1489_v52, %v1473_v35 }
 0x59c   : > { %v1494_v55 = vmul.f32 %v2142_v51, %v1490_v54 }
 0x59e   : > { %v1498_v56 = vadd.f32 %v2143_v53, %v1494_v55 }
 0x5a0   : > { %v1499_v57 = vpack.c.bf16 %v1498_v56, %v1498_v56 }
 0x5a2   : > { %1999 = vmatmul.msk.bf16.vlgmr.msrb.gmra.mxu0 %vm1034_vm1, %v1499_v57 }
 0x61f   : > { %v1532_v61 = vpop.f32.mrf.mxu0 }
 0x620   : > { %v1533_v62 = vadd.f32 %v2144_v60, %v1532_v61 }
 0x622   : > { %v1536_v63 = vmax.f32 %v1533_v62, 0.0 }
 0x624   : > { %v1537_v0 = vpack.c.bf16 %v1536_v63, %v1536_v63 }
 0x626   : > { %2016 = vmatmul.msk.bf16.vlgmr.msrb.gmra.mxu1 %vm1574_vm11, %v1537_v0 }
 0x627   : > { %v1534_v1 = vpop.f32.mrf.mxu0 }
 0x6a3   : > { %v1587_v3 = vpop.f32.mrf.mxu1 }
 0x6a4   : > { %v1588_v4 = vadd.f32 %v2145_v2, %v1587_v3 }
 0x6a6   : > { %v1591_v5 = vadd.f32 %v1588_v4, %v1498_v56 }
 0x6a8   : > { %v1594_v6 = vsel %vm1034_vm1, %v1591_v5, 0.0 }
 0x6a9   : > { %1595 = vadd.xlane.f32.xlu2 %v1594_v6 }
 0x6ab   : > { %v1589_v7 = vpop.f32.mrf.mxu1 }
 0x71c   : > { %v1596_v8 = vpop.xlane.xlu2 %1595 }
 0x71d   : > { %v1597_v9 = vmul.f32 %v1596_v8, %v1471_v32 }
 0x71f   : > { %v1598_v10 = vsub.f32 %v1591_v5, %v1597_v9 }
 0x721   : > { %v1599_v11 = vmul.f32 %v1598_v10, %v1598_v10 }
 0x723   : > { %v1600_v12 = vsel %vm1034_vm1, %v1599_v11, 0.0 }
 0x724   : > { %1601 = vadd.xlane.f32.xlu1 %v1600_v12 }
 0x797   : > { %v1602_v13 = vpop.xlane.xlu1 %1601 }
 0x798   : > { %v1603_v14 = vmul.f32 %v1602_v13, %v1471_v32 }
 0x79a   : > { %v1604_v15 = vadd.f32 1e-05, %v1603_v14 }
 0x79c   : > { %2168 = vrsqrt.f32 %v1604_v15  ;;  %vm1611_vm13 = vweird.f32 %v1604_v15 }
 0x7a2   : > { %v2169_v16 = vpop.eup %2168 }
 0x7a3   : > { %v1606_v17 = vmul.f32 %v2169_v16, %v1604_v15  ;;  %vm1612_vm12 = vweird.f32 %v2169_v16 }
 0x7a4   : > { %vm1613_vm14 = vmor %vm1611_vm13, %vm1612_vm12 }
 0x7a5   : > { %v1607_v18 = vmul.f32 %v2169_v16, %v1606_v17 }
 0x7a7   : > { %v1608_v19 = vmul.f32 0.5, %v1607_v18 }
 0x7a9   : > { %v1609_v20 = vsub.f32 1.5, %v1608_v19 }
 0x7ab   : > { %v1610_v21 = vmul.f32 %v2169_v16, %v1609_v20 }
 0x7ad   : > { %v1614_v23 = vsel %vm1613_vm14, %v2169_v16, %v1610_v21 }
 0x7ae   : > { %v1615_v25 = vmul.f32 %v1614_v23, %v1598_v10 }
 0x7b0   : > { %v1619_v26 = vmul.f32 %v2146_v22, %v1615_v25  ;;  %1628 = sbr.rel (%p2017_p3) target bundleno = 1974 (0x7b6), region = 124 }
 0x7b2   : > { %v1623_v27 = vadd.f32 %v2147_v24, %v1619_v26 }
 0x7b4   : > { %1624 = vst.msk [vmem:[#allocation2] sm:$0xff] %vm1034_vm1, %v1623_v27 }
 0x7b5   : > { %1629 = vst.msk [vmem:[%s1002_s12] sm:$0xff] %vm1034_vm1, %v1623_v27 }
 0x7b6 PF: > { %s2942_s2 = sld [smem:[#allocation18_spill]] }
 0x7b7   : > { %s2943_s0 = sld [smem:[#allocation14_spill]] }
 0x7b8   : > { %s2944_s30 = sld [smem:[#allocation15_spill]] }
 0x7b9   : > { %s2945_s20 = sld [smem:[#allocation21_spill]] }
 0x7ba   : > { %s2946_s21 = sld [smem:[#allocation16_spill]] }
 0x7bb   : > { %s2947_s1 = sld [smem:[#allocation17_spill]] }
 0x7bc   : > { %s38_s23 = sadd.s32 1, %s2942_s2   ;;  %s2948_s22 = sld [smem:[#allocation19_spill]] }
 0x7bd   : > { %p35_p4 = scmp.ge.s32.totalorder %s38_s23, 6   ;;  %s2949_s2 = sld [smem:[#allocation20_spill]] }
 0x7bf   :  { %37 = sbr.rel (!%p35_p4) target bundleno = 29 (0x1d), region = 234 }
 0x7c4   :  { %1649 = vsyncpa [#allocation4], 1 }
 0x7c5   :  { %1651 = vsyncpa [#allocation4 + $0x1], 1 }
 0x7c6   :  { %1652 = vsyncpa [#allocation6], 1 }
 0x7c7   :  { %1654 = vsyncpa [#allocation6 + $0x1], 1 }
 0x7c8   :  { %1655 = vsyncpa [#allocation9], 1 }
 0x7c9   :  { %1657 = vsyncpa [#allocation9 + $0x1], 1 }

</bundles_post_ra>
